<compile_context>
chip_gen: v7x
topology: tpu7x:2x2x1
jax: 0.10.0
libtpu: 0.0.40
codegen_flags: <defaults>
</compile_context>

<pallas_src>
import numpy as np
import jax
import jax.numpy as jnp
from jax import lax
from jax.experimental import pallas as pl
from jax.experimental.pallas import tpu as pltpu


def _make_kernel(Cp, H, W, K, NB, Lb):
    P = (K - 1) // 2
    KK = K * K
    center = P * K + P
    # Flattened lane offset of each kernel tap (dy, dx) relative to the output pixel.
    offs = [(dy - P) * W + (dx - P) for dy in range(K) for dx in range(K)]

    def kernel(x_ref, w1_ref, b1_ref, w2_ref, b2_ref, m_ref, o_ref):
        # x_ref:  (Cp, Lb)  activations, lane-dense (Lb = samples_per_block * H*W)
        # w*_ref: (NB, KK, Cp, Cp) per-tap weight matrices
        # b*_ref: (NB, Cp, 1)      biases (0.1 folded into conv2 w/b)
        # m_ref:  (KK, Lb)         1.0 where tap stays inside the image, else 0.0
        # o_ref:  (Cp, Lb)

        def conv(a, w_ref, b_ref, blk):
            # Center tap is always inside the image: no roll, no mask.
            acc = jnp.dot(w_ref[blk, center, :, :], a,
                          preferred_element_type=jnp.float32)
            for t in range(KK):
                if t == center:
                    continue
                # s[:, p] = a[:, p + off] (wrap-around / out-of-image zeroed by mask)
                shifted = pltpu.roll(a, (-offs[t]) % Lb, axis=1)
                shifted = shifted * m_ref[pl.ds(t, 1), :]      # zero 'same' padding
                acc = acc + jnp.dot(w_ref[blk, t, :, :], shifted,
                                    preferred_element_type=jnp.float32)
            return acc + b_ref[blk, :, :]                       # lane-broadcast bias

        xc = x_ref[...]
        for blk in range(NB):                                   # all blocks fused
            y = jnp.maximum(conv(xc, w1_ref, b1_ref, blk), 0.0)  # conv1 + bias + ReLU
            xc = xc + conv(y, w2_ref, b2_ref, blk)               # + 0.1*conv2 (folded)
        o_ref[...] = xc

    return kernel


@jax.jit
def residual_block_module_forward(x_nchw, w1s, b1s, w2s, b2s, masks):
    """x_nchw: [N,C,H,W] f32; w*s: [NB,K*K,Cp,Cp]; b*s: [NB,Cp,1]; masks: [K*K, Lb]."""
    N, C, H, W = x_nchw.shape
    NB, KK, Cp, _ = w1s.shape
    K = int(round(KK ** 0.5))
    HW = H * W
    Lb = masks.shape[1]                 # lanes per grid block (= samples_per_block * HW)
    n_steps = (N * HW) // Lb

    # [N,C,H,W] -> [Cp, N*HW]: channel-major, batch folded into the lane dim.
    x2d = jnp.transpose(x_nchw, (1, 0, 2, 3)).reshape(C, N * HW)
    x2d = jnp.pad(x2d, ((0, Cp - C), (0, 0)))

    kernel = _make_kernel(Cp, H, W, K, NB, Lb)

    out2d = pl.pallas_call(
        kernel,
        out_shape=jax.ShapeDtypeStruct((Cp, N * HW), jnp.float32),
        grid=(n_steps,),
        in_specs=[
            pl.BlockSpec((Cp, Lb), lambda i: (0, i)),                 # activations
            pl.BlockSpec((NB, KK, Cp, Cp), lambda i: (0, 0, 0, 0)),   # conv1 taps
            pl.BlockSpec((NB, Cp, 1), lambda i: (0, 0, 0)),           # conv1 bias
            pl.BlockSpec((NB, KK, Cp, Cp), lambda i: (0, 0, 0, 0)),   # conv2 taps (0.1 folded)
            pl.BlockSpec((NB, Cp, 1), lambda i: (0, 0, 0)),           # conv2 bias (0.1 folded)
            pl.BlockSpec((KK, Lb), lambda i: (0, 0)),                 # boundary masks
        ],
        out_specs=pl.BlockSpec((Cp, Lb), lambda i: (0, i)),
        compiler_params=pltpu.CompilerParams(
            dimension_semantics=("parallel",)),                       # v7x: both TCs
    )(x2d, w1s, b1s, w2s, b2s, masks)

    out = out2d[:C].reshape(C, N, H, W).transpose(1, 0, 2, 3)
    return out


def _pick_grid_steps(N, H, W):
    """2 'parallel' grid steps on multi-TensorCore chips (v7x) so both TCs get
    a half-batch; a single step elsewhere (v5e/v6e are 1 TC -> extra steps are
    pure ~0.35us/step pipeline overhead)."""
    try:
        kind = jax.devices()[0].device_kind.lower()
    except Exception:
        kind = ""
    if "v7" in kind and N % 2 == 0 and ((N // 2) * H * W) % 128 == 0:
        return 2
    return 1


def prepare_params(params, c_pad):
    """params: per-block (w1, b1, w2, b2); w PyTorch OIHW [C,C,K,K], b [C].
    One-time host-side transform: split weights into per-tap [K*K, Cp, Cp]
    matrices (zero-padded channels) and fold the 0.1 residual scale into conv2."""
    def taps(w, scale=1.0):
        Co, Ci, K, _ = w.shape
        wt = jnp.transpose(w, (2, 3, 0, 1)).reshape(K * K, Co, Ci) * scale
        return jnp.pad(wt, ((0, 0), (0, c_pad - Co), (0, c_pad - Ci)))

    def bias(b, scale=1.0):
        return jnp.pad(b * scale, (0, c_pad - b.shape[0])).reshape(c_pad, 1)

    w1s = jnp.stack([taps(w1) for (w1, _, _, _) in params])        # [NB, KK, Cp, Cp]
    b1s = jnp.stack([bias(b1) for (_, b1, _, _) in params])        # [NB, Cp, 1]
    w2s = jnp.stack([taps(w2, 0.1) for (_, _, w2, _) in params])
    b2s = jnp.stack([bias(b2, 0.1) for (_, _, _, b2) in params])
    return w1s, b1s, w2s, b2s


def make_boundary_masks(H, W, K, samples_per_block):
    """masks[t, n*H*W + y*W + x] = 1 if tap t stays inside the image at (y, x).
    Tiled per sample so batch-in-lane concatenation needs no extra logic."""
    P = (K - 1) // 2
    yy, xx = np.meshgrid(np.arange(H), np.arange(W), indexing="ij")
    rows = []
    for dy in range(K):
        for dx in range(K):
            valid = ((yy + dy - P >= 0) & (yy + dy - P < H) &
                     (xx + dx - P >= 0) & (xx + dx - P < W))
            rows.append(np.tile(valid.reshape(-1), samples_per_block))
    return jnp.asarray(np.stack(rows).astype(np.float32))          # (K*K, spb*H*W)


def ref_forward(x_nchw, params):
    """Pure-JAX reference matching the PyTorch module (NCHW, OIHW weights)."""
    dn = ("NCHW", "OIHW", "NCHW")
    x = x_nchw
    for (w1, b1, w2, b2) in params:
        y = lax.conv_general_dilated(x, w1, (1, 1), "SAME", dimension_numbers=dn)
        y = jnp.maximum(y + b1[None, :, None, None], 0.0)
        y = lax.conv_general_dilated(y, w2, (1, 1), "SAME", dimension_numbers=dn)
        y = y + b2[None, :, None, None]
        x = x + 0.1 * y
    return x


if __name__ == "__main__":
    # Module config: filter_size = (kernel_size=3, in_c=4, out_c=4), num_blocks=2
    K, C = 3, 4
    num_blocks = 2
    N, H, W = 2, 16, 16  # PyTorch input: NCHW [2, 4, 16, 16]

    key = jax.random.PRNGKey(0)
    keys = jax.random.split(key, 4 * num_blocks + 1)

    params = []
    for b in range(num_blocks):
        k1, k2, k3, k4 = keys[4 * b: 4 * b + 4]
        params.append((
            0.1 * jax.random.normal(k1, (C, C, K, K), dtype=jnp.float32),  # conv1 w (OIHW)
            0.1 * jax.random.normal(k2, (C,), dtype=jnp.float32),          # conv1 b
            0.1 * jax.random.normal(k3, (C, C, K, K), dtype=jnp.float32),  # conv2 w
            0.1 * jax.random.normal(k4, (C,), dtype=jnp.float32),          # conv2 b
        ))
    params = tuple(params)

    x = jax.random.normal(keys[-1], (N, C, H, W), dtype=jnp.float32)

    Cp = ((C + 7) // 8) * 8                       # sublane-aligned channel count
    w1s, b1s, w2s, b2s = prepare_params(params, Cp)
    n_steps = _pick_grid_steps(N, H, W)
    masks = make_boundary_masks(H, W, K, N // n_steps)

    out = residual_block_module_forward(x, w1s, b1s, w2s, b2s, masks)
    out = jax.block_until_ready(out)

    ref = jax.block_until_ready(ref_forward(x, params))
    assert out.shape == (N, C, H, W)
    assert jnp.allclose(out, ref, atol=1e-4, rtol=1e-4), "mismatch vs JAX reference"

    print("KERNEL_OK")
</pallas_src>

<mosaic_0001>
module attributes {stable_mosaic.version = 11 : i64} {
  func.func @kernel(%arg0: i32, %arg1: memref<8x512xf32, #tpu.memory_space<vmem>>, %arg2: memref<2x9x8x8xf32, #tpu.memory_space<vmem>>, %arg3: memref<2x8x1xf32, #tpu.memory_space<vmem>>, %arg4: memref<2x9x8x8xf32, #tpu.memory_space<vmem>>, %arg5: memref<2x8x1xf32, #tpu.memory_space<vmem>>, %arg6: memref<9x512xf32, #tpu.memory_space<vmem>>, %arg7: memref<8x512xf32, #tpu.memory_space<vmem>>) attributes {dimension_semantics = [#tpu.dimension_semantics<parallel>], iteration_bounds = array<i64: 1>, scalar_prefetch = 0 : i64, scratch_operands = 0 : i64, tpu.core_type = #tpu.core_type<tc>, window_params = [{transform_indices = @transform_0, window_bounds = array<i64: 8, 512>}, {pipeline_mode = #tpu.pipeline_mode<synchronous>, transform_indices = @transform_1, window_bounds = array<i64: 2, 9, 8, 8>}, {pipeline_mode = #tpu.pipeline_mode<synchronous>, transform_indices = @transform_2, window_bounds = array<i64: 2, 8, 1>}, {pipeline_mode = #tpu.pipeline_mode<synchronous>, transform_indices = @transform_3, window_bounds = array<i64: 2, 9, 8, 8>}, {pipeline_mode = #tpu.pipeline_mode<synchronous>, transform_indices = @transform_4, window_bounds = array<i64: 2, 8, 1>}, {pipeline_mode = #tpu.pipeline_mode<synchronous>, transform_indices = @transform_5, window_bounds = array<i64: 9, 512>}, {transform_indices = @transform_6, window_bounds = array<i64: 8, 512>}]} {
    %c0 = arith.constant 0 : index
    %c0_0 = arith.constant 0 : index
    %0 = vector.load %arg1[%c0, %c0_0] : memref<8x512xf32, #tpu.memory_space<vmem>>, vector<8x512xf32>
    %c0_1 = arith.constant 0 : index
    %c4 = arith.constant 4 : index
    %c0_2 = arith.constant 0 : index
    %c0_3 = arith.constant 0 : index
    %1 = vector.load %arg2[%c0_1, %c4, %c0_2, %c0_3] : memref<2x9x8x8xf32, #tpu.memory_space<vmem>>, vector<1x1x8x8xf32>
    %2 = vector.shape_cast %1 : vector<1x1x8x8xf32> to vector<8x8xf32>
    %cst = arith.constant dense<0.000000e+00> : vector<8x512xf32>
    %3 = tpu.matmul %2, %0, %cst {dimension_numbers = #tpu.dot_dimension_numbers<[1], [0], [0], [1], [0, 0, 1, 1], [], []>} : vector<8x8xf32>, vector<8x512xf32>, vector<8x512xf32> -> vector<8x512xf32>
    %c17_i32 = arith.constant 17 : i32
    %4 = tpu.dynamic_rotate %0 by %c17_i32 dim 1 : vector<8x512xf32>, i32 -> vector<8x512xf32>
    %c0_4 = arith.constant 0 : index
    %c0_5 = arith.constant 0 : index
    %5 = vector.load %arg6[%c0_4, %c0_5] : memref<9x512xf32, #tpu.memory_space<vmem>>, vector<1x512xf32>
    %6 = vector.broadcast %5 : vector<1x512xf32> to vector<8x512xf32>
    %7 = arith.mulf %4, %6 : vector<8x512xf32>
    %c0_6 = arith.constant 0 : index
    %c0_7 = arith.constant 0 : index
    %c0_8 = arith.constant 0 : index
    %c0_9 = arith.constant 0 : index
    %8 = vector.load %arg2[%c0_6, %c0_7, %c0_8, %c0_9] : memref<2x9x8x8xf32, #tpu.memory_space<vmem>>, vector<1x1x8x8xf32>
    %9 = vector.shape_cast %8 : vector<1x1x8x8xf32> to vector<8x8xf32>
    %cst_10 = arith.constant dense<0.000000e+00> : vector<8x512xf32>
    %10 = tpu.matmul %9, %7, %cst_10 {dimension_numbers = #tpu.dot_dimension_numbers<[1], [0], [0], [1], [0, 0, 1, 1], [], []>} : vector<8x8xf32>, vector<8x512xf32>, vector<8x512xf32> -> vector<8x512xf32>
    %11 = arith.addf %3, %10 : vector<8x512xf32>
    %c16_i32 = arith.constant 16 : i32
    %12 = tpu.dynamic_rotate %0 by %c16_i32 dim 1 : vector<8x512xf32>, i32 -> vector<8x512xf32>
    %c1 = arith.constant 1 : index
    %c0_11 = arith.constant 0 : index
    %13 = vector.load %arg6[%c1, %c0_11] : memref<9x512xf32, #tpu.memory_space<vmem>>, vector<1x512xf32>
    %14 = vector.broadcast %13 : vector<1x512xf32> to vector<8x512xf32>
    %15 = arith.mulf %12, %14 : vector<8x512xf32>
    %c0_12 = arith.constant 0 : index
    %c1_13 = arith.constant 1 : index
    %c0_14 = arith.constant 0 : index
    %c0_15 = arith.constant 0 : index
    %16 = vector.load %arg2[%c0_12, %c1_13, %c0_14, %c0_15] : memref<2x9x8x8xf32, #tpu.memory_space<vmem>>, vector<1x1x8x8xf32>
    %17 = vector.shape_cast %16 : vector<1x1x8x8xf32> to vector<8x8xf32>
    %cst_16 = arith.constant dense<0.000000e+00> : vector<8x512xf32>
    %18 = tpu.matmul %17, %15, %cst_16 {dimension_numbers = #tpu.dot_dimension_numbers<[1], [0], [0], [1], [0, 0, 1, 1], [], []>} : vector<8x8xf32>, vector<8x512xf32>, vector<8x512xf32> -> vector<8x512xf32>
    %19 = arith.addf %11, %18 : vector<8x512xf32>
    %c15_i32 = arith.constant 15 : i32
    %20 = tpu.dynamic_rotate %0 by %c15_i32 dim 1 : vector<8x512xf32>, i32 -> vector<8x512xf32>
    %c2 = arith.constant 2 : index
    %c0_17 = arith.constant 0 : index
    %21 = vector.load %arg6[%c2, %c0_17] : memref<9x512xf32, #tpu.memory_space<vmem>>, vector<1x512xf32>
    %22 = vector.broadcast %21 : vector<1x512xf32> to vector<8x512xf32>
    %23 = arith.mulf %20, %22 : vector<8x512xf32>
    %c0_18 = arith.constant 0 : index
    %c2_19 = arith.constant 2 : index
    %c0_20 = arith.constant 0 : index
    %c0_21 = arith.constant 0 : index
    %24 = vector.load %arg2[%c0_18, %c2_19, %c0_20, %c0_21] : memref<2x9x8x8xf32, #tpu.memory_space<vmem>>, vector<1x1x8x8xf32>
    %25 = vector.shape_cast %24 : vector<1x1x8x8xf32> to vector<8x8xf32>
    %cst_22 = arith.constant dense<0.000000e+00> : vector<8x512xf32>
    %26 = tpu.matmul %25, %23, %cst_22 {dimension_numbers = #tpu.dot_dimension_numbers<[1], [0], [0], [1], [0, 0, 1, 1], [], []>} : vector<8x8xf32>, vector<8x512xf32>, vector<8x512xf32> -> vector<8x512xf32>
    %27 = arith.addf %19, %26 : vector<8x512xf32>
    %c1_i32 = arith.constant 1 : i32
    %28 = tpu.dynamic_rotate %0 by %c1_i32 dim 1 : vector<8x512xf32>, i32 -> vector<8x512xf32>
    %c3 = arith.constant 3 : index
    %c0_23 = arith.constant 0 : index
    %29 = vector.load %arg6[%c3, %c0_23] : memref<9x512xf32, #tpu.memory_space<vmem>>, vector<1x512xf32>
    %30 = vector.broadcast %29 : vector<1x512xf32> to vector<8x512xf32>
    %31 = arith.mulf %28, %30 : vector<8x512xf32>
    %c0_24 = arith.constant 0 : index
    %c3_25 = arith.constant 3 : index
    %c0_26 = arith.constant 0 : index
    %c0_27 = arith.constant 0 : index
    %32 = vector.load %arg2[%c0_24, %c3_25, %c0_26, %c0_27] : memref<2x9x8x8xf32, #tpu.memory_space<vmem>>, vector<1x1x8x8xf32>
    %33 = vector.shape_cast %32 : vector<1x1x8x8xf32> to vector<8x8xf32>
    %cst_28 = arith.constant dense<0.000000e+00> : vector<8x512xf32>
    %34 = tpu.matmul %33, %31, %cst_28 {dimension_numbers = #tpu.dot_dimension_numbers<[1], [0], [0], [1], [0, 0, 1, 1], [], []>} : vector<8x8xf32>, vector<8x512xf32>, vector<8x512xf32> -> vector<8x512xf32>
    %35 = arith.addf %27, %34 : vector<8x512xf32>
    %c511_i32 = arith.constant 511 : i32
    %36 = tpu.dynamic_rotate %0 by %c511_i32 dim 1 : vector<8x512xf32>, i32 -> vector<8x512xf32>
    %c5 = arith.constant 5 : index
    %c0_29 = arith.constant 0 : index
    %37 = vector.load %arg6[%c5, %c0_29] : memref<9x512xf32, #tpu.memory_space<vmem>>, vector<1x512xf32>
    %38 = vector.broadcast %37 : vector<1x512xf32> to vector<8x512xf32>
    %39 = arith.mulf %36, %38 : vector<8x512xf32>
    %c0_30 = arith.constant 0 : index
    %c5_31 = arith.constant 5 : index
    %c0_32 = arith.constant 0 : index
    %c0_33 = arith.constant 0 : index
    %40 = vector.load %arg2[%c0_30, %c5_31, %c0_32, %c0_33] : memref<2x9x8x8xf32, #tpu.memory_space<vmem>>, vector<1x1x8x8xf32>
    %41 = vector.shape_cast %40 : vector<1x1x8x8xf32> to vector<8x8xf32>
    %cst_34 = arith.constant dense<0.000000e+00> : vector<8x512xf32>
    %42 = tpu.matmul %41, %39, %cst_34 {dimension_numbers = #tpu.dot_dimension_numbers<[1], [0], [0], [1], [0, 0, 1, 1], [], []>} : vector<8x8xf32>, vector<8x512xf32>, vector<8x512xf32> -> vector<8x512xf32>
    %43 = arith.addf %35, %42 : vector<8x512xf32>
    %c497_i32 = arith.constant 497 : i32
    %44 = tpu.dynamic_rotate %0 by %c497_i32 dim 1 : vector<8x512xf32>, i32 -> vector<8x512xf32>
    %c6 = arith.constant 6 : index
    %c0_35 = arith.constant 0 : index
    %45 = vector.load %arg6[%c6, %c0_35] : memref<9x512xf32, #tpu.memory_space<vmem>>, vector<1x512xf32>
    %46 = vector.broadcast %45 : vector<1x512xf32> to vector<8x512xf32>
    %47 = arith.mulf %44, %46 : vector<8x512xf32>
    %c0_36 = arith.constant 0 : index
    %c6_37 = arith.constant 6 : index
    %c0_38 = arith.constant 0 : index
    %c0_39 = arith.constant 0 : index
    %48 = vector.load %arg2[%c0_36, %c6_37, %c0_38, %c0_39] : memref<2x9x8x8xf32, #tpu.memory_space<vmem>>, vector<1x1x8x8xf32>
    %49 = vector.shape_cast %48 : vector<1x1x8x8xf32> to vector<8x8xf32>
    %cst_40 = arith.constant dense<0.000000e+00> : vector<8x512xf32>
    %50 = tpu.matmul %49, %47, %cst_40 {dimension_numbers = #tpu.dot_dimension_numbers<[1], [0], [0], [1], [0, 0, 1, 1], [], []>} : vector<8x8xf32>, vector<8x512xf32>, vector<8x512xf32> -> vector<8x512xf32>
    %51 = arith.addf %43, %50 : vector<8x512xf32>
    %c496_i32 = arith.constant 496 : i32
    %52 = tpu.dynamic_rotate %0 by %c496_i32 dim 1 : vector<8x512xf32>, i32 -> vector<8x512xf32>
    %c7 = arith.constant 7 : index
    %c0_41 = arith.constant 0 : index
    %53 = vector.load %arg6[%c7, %c0_41] : memref<9x512xf32, #tpu.memory_space<vmem>>, vector<1x512xf32>
    %54 = vector.broadcast %53 : vector<1x512xf32> to vector<8x512xf32>
    %55 = arith.mulf %52, %54 : vector<8x512xf32>
    %c0_42 = arith.constant 0 : index
    %c7_43 = arith.constant 7 : index
    %c0_44 = arith.constant 0 : index
    %c0_45 = arith.constant 0 : index
    %56 = vector.load %arg2[%c0_42, %c7_43, %c0_44, %c0_45] : memref<2x9x8x8xf32, #tpu.memory_space<vmem>>, vector<1x1x8x8xf32>
    %57 = vector.shape_cast %56 : vector<1x1x8x8xf32> to vector<8x8xf32>
    %cst_46 = arith.constant dense<0.000000e+00> : vector<8x512xf32>
    %58 = tpu.matmul %57, %55, %cst_46 {dimension_numbers = #tpu.dot_dimension_numbers<[1], [0], [0], [1], [0, 0, 1, 1], [], []>} : vector<8x8xf32>, vector<8x512xf32>, vector<8x512xf32> -> vector<8x512xf32>
    %59 = arith.addf %51, %58 : vector<8x512xf32>
    %c495_i32 = arith.constant 495 : i32
    %60 = tpu.dynamic_rotate %0 by %c495_i32 dim 1 : vector<8x512xf32>, i32 -> vector<8x512xf32>
    %c8 = arith.constant 8 : index
    %c0_47 = arith.constant 0 : index
    %61 = vector.load %arg6[%c8, %c0_47] : memref<9x512xf32, #tpu.memory_space<vmem>>, vector<1x512xf32>
    %62 = vector.broadcast %61 : vector<1x512xf32> to vector<8x512xf32>
    %63 = arith.mulf %60, %62 : vector<8x512xf32>
    %c0_48 = arith.constant 0 : index
    %c8_49 = arith.constant 8 : index
    %c0_50 = arith.constant 0 : index
    %c0_51 = arith.constant 0 : index
    %64 = vector.load %arg2[%c0_48, %c8_49, %c0_50, %c0_51] : memref<2x9x8x8xf32, #tpu.memory_space<vmem>>, vector<1x1x8x8xf32>
    %65 = vector.shape_cast %64 : vector<1x1x8x8xf32> to vector<8x8xf32>
    %cst_52 = arith.constant dense<0.000000e+00> : vector<8x512xf32>
    %66 = tpu.matmul %65, %63, %cst_52 {dimension_numbers = #tpu.dot_dimension_numbers<[1], [0], [0], [1], [0, 0, 1, 1], [], []>} : vector<8x8xf32>, vector<8x512xf32>, vector<8x512xf32> -> vector<8x512xf32>
    %67 = arith.addf %59, %66 : vector<8x512xf32>
    %c0_53 = arith.constant 0 : index
    %c0_54 = arith.constant 0 : index
    %c0_55 = arith.constant 0 : index
    %68 = vector.load %arg3[%c0_53, %c0_54, %c0_55] : memref<2x8x1xf32, #tpu.memory_space<vmem>>, vector<1x8x1xf32>
    %69 = vector.shape_cast %68 : vector<1x8x1xf32> to vector<8x1xf32>
    %70 = vector.broadcast %69 : vector<8x1xf32> to vector<8x512xf32>
    %71 = arith.addf %67, %70 : vector<8x512xf32>
    %cst_56 = arith.constant 0.000000e+00 : f32
    %72 = vector.broadcast %cst_56 : f32 to vector<8x512xf32>
    %73 = arith.maximumf %71, %72 : vector<8x512xf32>
    %c0_57 = arith.constant 0 : index
    %c4_58 = arith.constant 4 : index
    %c0_59 = arith.constant 0 : index
    %c0_60 = arith.constant 0 : index
    %74 = vector.load %arg4[%c0_57, %c4_58, %c0_59, %c0_60] : memref<2x9x8x8xf32, #tpu.memory_space<vmem>>, vector<1x1x8x8xf32>
    %75 = vector.shape_cast %74 : vector<1x1x8x8xf32> to vector<8x8xf32>
    %cst_61 = arith.constant dense<0.000000e+00> : vector<8x512xf32>
    %76 = tpu.matmul %75, %73, %cst_61 {dimension_numbers = #tpu.dot_dimension_numbers<[1], [0], [0], [1], [0, 0, 1, 1], [], []>} : vector<8x8xf32>, vector<8x512xf32>, vector<8x512xf32> -> vector<8x512xf32>
    %c17_i32_62 = arith.constant 17 : i32
    %77 = tpu.dynamic_rotate %73 by %c17_i32_62 dim 1 : vector<8x512xf32>, i32 -> vector<8x512xf32>
    %c0_63 = arith.constant 0 : index
    %c0_64 = arith.constant 0 : index
    %78 = vector.load %arg6[%c0_63, %c0_64] : memref<9x512xf32, #tpu.memory_space<vmem>>, vector<1x512xf32>
    %79 = vector.broadcast %78 : vector<1x512xf32> to vector<8x512xf32>
    %80 = arith.mulf %77, %79 : vector<8x512xf32>
    %c0_65 = arith.constant 0 : index
    %c0_66 = arith.constant 0 : index
    %c0_67 = arith.constant 0 : index
    %c0_68 = arith.constant 0 : index
    %81 = vector.load %arg4[%c0_65, %c0_66, %c0_67, %c0_68] : memref<2x9x8x8xf32, #tpu.memory_space<vmem>>, vector<1x1x8x8xf32>
    %82 = vector.shape_cast %81 : vector<1x1x8x8xf32> to vector<8x8xf32>
    %cst_69 = arith.constant dense<0.000000e+00> : vector<8x512xf32>
    %83 = tpu.matmul %82, %80, %cst_69 {dimension_numbers = #tpu.dot_dimension_numbers<[1], [0], [0], [1], [0, 0, 1, 1], [], []>} : vector<8x8xf32>, vector<8x512xf32>, vector<8x512xf32> -> vector<8x512xf32>
    %84 = arith.addf %76, %83 : vector<8x512xf32>
    %c16_i32_70 = arith.constant 16 : i32
    %85 = tpu.dynamic_rotate %73 by %c16_i32_70 dim 1 : vector<8x512xf32>, i32 -> vector<8x512xf32>
    %c1_71 = arith.constant 1 : index
    %c0_72 = arith.constant 0 : index
    %86 = vector.load %arg6[%c1_71, %c0_72] : memref<9x512xf32, #tpu.memory_space<vmem>>, vector<1x512xf32>
    %87 = vector.broadcast %86 : vector<1x512xf32> to vector<8x512xf32>
    %88 = arith.mulf %85, %87 : vector<8x512xf32>
    %c0_73 = arith.constant 0 : index
    %c1_74 = arith.constant 1 : index
    %c0_75 = arith.constant 0 : index
    %c0_76 = arith.constant 0 : index
    %89 = vector.load %arg4[%c0_73, %c1_74, %c0_75, %c0_76] : memref<2x9x8x8xf32, #tpu.memory_space<vmem>>, vector<1x1x8x8xf32>
    %90 = vector.shape_cast %89 : vector<1x1x8x8xf32> to vector<8x8xf32>
    %cst_77 = arith.constant dense<0.000000e+00> : vector<8x512xf32>
    %91 = tpu.matmul %90, %88, %cst_77 {dimension_numbers = #tpu.dot_dimension_numbers<[1], [0], [0], [1], [0, 0, 1, 1], [], []>} : vector<8x8xf32>, vector<8x512xf32>, vector<8x512xf32> -> vector<8x512xf32>
    %92 = arith.addf %84, %91 : vector<8x512xf32>
    %c15_i32_78 = arith.constant 15 : i32
    %93 = tpu.dynamic_rotate %73 by %c15_i32_78 dim 1 : vector<8x512xf32>, i32 -> vector<8x512xf32>
    %c2_79 = arith.constant 2 : index
    %c0_80 = arith.constant 0 : index
    %94 = vector.load %arg6[%c2_79, %c0_80] : memref<9x512xf32, #tpu.memory_space<vmem>>, vector<1x512xf32>
    %95 = vector.broadcast %94 : vector<1x512xf32> to vector<8x512xf32>
    %96 = arith.mulf %93, %95 : vector<8x512xf32>
    %c0_81 = arith.constant 0 : index
    %c2_82 = arith.constant 2 : index
    %c0_83 = arith.constant 0 : index
    %c0_84 = arith.constant 0 : index
    %97 = vector.load %arg4[%c0_81, %c2_82, %c0_83, %c0_84] : memref<2x9x8x8xf32, #tpu.memory_space<vmem>>, vector<1x1x8x8xf32>
    %98 = vector.shape_cast %97 : vector<1x1x8x8xf32> to vector<8x8xf32>
    %cst_85 = arith.constant dense<0.000000e+00> : vector<8x512xf32>
    %99 = tpu.matmul %98, %96, %cst_85 {dimension_numbers = #tpu.dot_dimension_numbers<[1], [0], [0], [1], [0, 0, 1, 1], [], []>} : vector<8x8xf32>, vector<8x512xf32>, vector<8x512xf32> -> vector<8x512xf32>
    %100 = arith.addf %92, %99 : vector<8x512xf32>
    %c1_i32_86 = arith.constant 1 : i32
    %101 = tpu.dynamic_rotate %73 by %c1_i32_86 dim 1 : vector<8x512xf32>, i32 -> vector<8x512xf32>
    %c3_87 = arith.constant 3 : index
    %c0_88 = arith.constant 0 : index
    %102 = vector.load %arg6[%c3_87, %c0_88] : memref<9x512xf32, #tpu.memory_space<vmem>>, vector<1x512xf32>
    %103 = vector.broadcast %102 : vector<1x512xf32> to vector<8x512xf32>
    %104 = arith.mulf %101, %103 : vector<8x512xf32>
    %c0_89 = arith.constant 0 : index
    %c3_90 = arith.constant 3 : index
    %c0_91 = arith.constant 0 : index
    %c0_92 = arith.constant 0 : index
    %105 = vector.load %arg4[%c0_89, %c3_90, %c0_91, %c0_92] : memref<2x9x8x8xf32, #tpu.memory_space<vmem>>, vector<1x1x8x8xf32>
    %106 = vector.shape_cast %105 : vector<1x1x8x8xf32> to vector<8x8xf32>
    %cst_93 = arith.constant dense<0.000000e+00> : vector<8x512xf32>
    %107 = tpu.matmul %106, %104, %cst_93 {dimension_numbers = #tpu.dot_dimension_numbers<[1], [0], [0], [1], [0, 0, 1, 1], [], []>} : vector<8x8xf32>, vector<8x512xf32>, vector<8x512xf32> -> vector<8x512xf32>
    %108 = arith.addf %100, %107 : vector<8x512xf32>
    %c511_i32_94 = arith.constant 511 : i32
    %109 = tpu.dynamic_rotate %73 by %c511_i32_94 dim 1 : vector<8x512xf32>, i32 -> vector<8x512xf32>
    %c5_95 = arith.constant 5 : index
    %c0_96 = arith.constant 0 : index
    %110 = vector.load %arg6[%c5_95, %c0_96] : memref<9x512xf32, #tpu.memory_space<vmem>>, vector<1x512xf32>
    %111 = vector.broadcast %110 : vector<1x512xf32> to vector<8x512xf32>
    %112 = arith.mulf %109, %111 : vector<8x512xf32>
    %c0_97 = arith.constant 0 : index
    %c5_98 = arith.constant 5 : index
    %c0_99 = arith.constant 0 : index
    %c0_100 = arith.constant 0 : index
    %113 = vector.load %arg4[%c0_97, %c5_98, %c0_99, %c0_100] : memref<2x9x8x8xf32, #tpu.memory_space<vmem>>, vector<1x1x8x8xf32>
    %114 = vector.shape_cast %113 : vector<1x1x8x8xf32> to vector<8x8xf32>
    %cst_101 = arith.constant dense<0.000000e+00> : vector<8x512xf32>
    %115 = tpu.matmul %114, %112, %cst_101 {dimension_numbers = #tpu.dot_dimension_numbers<[1], [0], [0], [1], [0, 0, 1, 1], [], []>} : vector<8x8xf32>, vector<8x512xf32>, vector<8x512xf32> -> vector<8x512xf32>
    %116 = arith.addf %108, %115 : vector<8x512xf32>
    %c497_i32_102 = arith.constant 497 : i32
    %117 = tpu.dynamic_rotate %73 by %c497_i32_102 dim 1 : vector<8x512xf32>, i32 -> vector<8x512xf32>
    %c6_103 = arith.constant 6 : index
    %c0_104 = arith.constant 0 : index
    %118 = vector.load %arg6[%c6_103, %c0_104] : memref<9x512xf32, #tpu.memory_space<vmem>>, vector<1x512xf32>
    %119 = vector.broadcast %118 : vector<1x512xf32> to vector<8x512xf32>
    %120 = arith.mulf %117, %119 : vector<8x512xf32>
    %c0_105 = arith.constant 0 : index
    %c6_106 = arith.constant 6 : index
    %c0_107 = arith.constant 0 : index
    %c0_108 = arith.constant 0 : index
    %121 = vector.load %arg4[%c0_105, %c6_106, %c0_107, %c0_108] : memref<2x9x8x8xf32, #tpu.memory_space<vmem>>, vector<1x1x8x8xf32>
    %122 = vector.shape_cast %121 : vector<1x1x8x8xf32> to vector<8x8xf32>
    %cst_109 = arith.constant dense<0.000000e+00> : vector<8x512xf32>
    %123 = tpu.matmul %122, %120, %cst_109 {dimension_numbers = #tpu.dot_dimension_numbers<[1], [0], [0], [1], [0, 0, 1, 1], [], []>} : vector<8x8xf32>, vector<8x512xf32>, vector<8x512xf32> -> vector<8x512xf32>
    %124 = arith.addf %116, %123 : vector<8x512xf32>
    %c496_i32_110 = arith.constant 496 : i32
    %125 = tpu.dynamic_rotate %73 by %c496_i32_110 dim 1 : vector<8x512xf32>, i32 -> vector<8x512xf32>
    %c7_111 = arith.constant 7 : index
    %c0_112 = arith.constant 0 : index
    %126 = vector.load %arg6[%c7_111, %c0_112] : memref<9x512xf32, #tpu.memory_space<vmem>>, vector<1x512xf32>
    %127 = vector.broadcast %126 : vector<1x512xf32> to vector<8x512xf32>
    %128 = arith.mulf %125, %127 : vector<8x512xf32>
    %c0_113 = arith.constant 0 : index
    %c7_114 = arith.constant 7 : index
    %c0_115 = arith.constant 0 : index
    %c0_116 = arith.constant 0 : index
    %129 = vector.load %arg4[%c0_113, %c7_114, %c0_115, %c0_116] : memref<2x9x8x8xf32, #tpu.memory_space<vmem>>, vector<1x1x8x8xf32>
    %130 = vector.shape_cast %129 : vector<1x1x8x8xf32> to vector<8x8xf32>
    %cst_117 = arith.constant dense<0.000000e+00> : vector<8x512xf32>
    %131 = tpu.matmul %130, %128, %cst_117 {dimension_numbers = #tpu.dot_dimension_numbers<[1], [0], [0], [1], [0, 0, 1, 1], [], []>} : vector<8x8xf32>, vector<8x512xf32>, vector<8x512xf32> -> vector<8x512xf32>
    %132 = arith.addf %124, %131 : vector<8x512xf32>
    %c495_i32_118 = arith.constant 495 : i32
    %133 = tpu.dynamic_rotate %73 by %c495_i32_118 dim 1 : vector<8x512xf32>, i32 -> vector<8x512xf32>
    %c8_119 = arith.constant 8 : index
    %c0_120 = arith.constant 0 : index
    %134 = vector.load %arg6[%c8_119, %c0_120] : memref<9x512xf32, #tpu.memory_space<vmem>>, vector<1x512xf32>
    %135 = vector.broadcast %134 : vector<1x512xf32> to vector<8x512xf32>
    %136 = arith.mulf %133, %135 : vector<8x512xf32>
    %c0_121 = arith.constant 0 : index
    %c8_122 = arith.constant 8 : index
    %c0_123 = arith.constant 0 : index
    %c0_124 = arith.constant 0 : index
    %137 = vector.load %arg4[%c0_121, %c8_122, %c0_123, %c0_124] : memref<2x9x8x8xf32, #tpu.memory_space<vmem>>, vector<1x1x8x8xf32>
    %138 = vector.shape_cast %137 : vector<1x1x8x8xf32> to vector<8x8xf32>
    %cst_125 = arith.constant dense<0.000000e+00> : vector<8x512xf32>
    %139 = tpu.matmul %138, %136, %cst_125 {dimension_numbers = #tpu.dot_dimension_numbers<[1], [0], [0], [1], [0, 0, 1, 1], [], []>} : vector<8x8xf32>, vector<8x512xf32>, vector<8x512xf32> -> vector<8x512xf32>
    %140 = arith.addf %132, %139 : vector<8x512xf32>
    %c0_126 = arith.constant 0 : index
    %c0_127 = arith.constant 0 : index
    %c0_128 = arith.constant 0 : index
    %141 = vector.load %arg5[%c0_126, %c0_127, %c0_128] : memref<2x8x1xf32, #tpu.memory_space<vmem>>, vector<1x8x1xf32>
    %142 = vector.shape_cast %141 : vector<1x8x1xf32> to vector<8x1xf32>
    %143 = vector.broadcast %142 : vector<8x1xf32> to vector<8x512xf32>
    %144 = arith.addf %140, %143 : vector<8x512xf32>
    %145 = arith.addf %0, %144 : vector<8x512xf32>
    %c1_129 = arith.constant 1 : index
    %c4_130 = arith.constant 4 : index
    %c0_131 = arith.constant 0 : index
    %c0_132 = arith.constant 0 : index
    %146 = vector.load %arg2[%c1_129, %c4_130, %c0_131, %c0_132] : memref<2x9x8x8xf32, #tpu.memory_space<vmem>>, vector<1x1x8x8xf32>
    %147 = vector.shape_cast %146 : vector<1x1x8x8xf32> to vector<8x8xf32>
    %cst_133 = arith.constant dense<0.000000e+00> : vector<8x512xf32>
    %148 = tpu.matmul %147, %145, %cst_133 {dimension_numbers = #tpu.dot_dimension_numbers<[1], [0], [0], [1], [0, 0, 1, 1], [], []>} : vector<8x8xf32>, vector<8x512xf32>, vector<8x512xf32> -> vector<8x512xf32>
    %c17_i32_134 = arith.constant 17 : i32
    %149 = tpu.dynamic_rotate %145 by %c17_i32_134 dim 1 : vector<8x512xf32>, i32 -> vector<8x512xf32>
    %c0_135 = arith.constant 0 : index
    %c0_136 = arith.constant 0 : index
    %150 = vector.load %arg6[%c0_135, %c0_136] : memref<9x512xf32, #tpu.memory_space<vmem>>, vector<1x512xf32>
    %151 = vector.broadcast %150 : vector<1x512xf32> to vector<8x512xf32>
    %152 = arith.mulf %149, %151 : vector<8x512xf32>
    %c1_137 = arith.constant 1 : index
    %c0_138 = arith.constant 0 : index
    %c0_139 = arith.constant 0 : index
    %c0_140 = arith.constant 0 : index
    %153 = vector.load %arg2[%c1_137, %c0_138, %c0_139, %c0_140] : memref<2x9x8x8xf32, #tpu.memory_space<vmem>>, vector<1x1x8x8xf32>
    %154 = vector.shape_cast %153 : vector<1x1x8x8xf32> to vector<8x8xf32>
    %cst_141 = arith.constant dense<0.000000e+00> : vector<8x512xf32>
    %155 = tpu.matmul %154, %152, %cst_141 {dimension_numbers = #tpu.dot_dimension_numbers<[1], [0], [0], [1], [0, 0, 1, 1], [], []>} : vector<8x8xf32>, vector<8x512xf32>, vector<8x512xf32> -> vector<8x512xf32>
    %156 = arith.addf %148, %155 : vector<8x512xf32>
    %c16_i32_142 = arith.constant 16 : i32
    %157 = tpu.dynamic_rotate %145 by %c16_i32_142 dim 1 : vector<8x512xf32>, i32 -> vector<8x512xf32>
    %c1_143 = arith.constant 1 : index
    %c0_144 = arith.constant 0 : index
    %158 = vector.load %arg6[%c1_143, %c0_144] : memref<9x512xf32, #tpu.memory_space<vmem>>, vector<1x512xf32>
    %159 = vector.broadcast %158 : vector<1x512xf32> to vector<8x512xf32>
    %160 = arith.mulf %157, %159 : vector<8x512xf32>
    %c1_145 = arith.constant 1 : index
    %c1_146 = arith.constant 1 : index
    %c0_147 = arith.constant 0 : index
    %c0_148 = arith.constant 0 : index
    %161 = vector.load %arg2[%c1_145, %c1_146, %c0_147, %c0_148] : memref<2x9x8x8xf32, #tpu.memory_space<vmem>>, vector<1x1x8x8xf32>
    %162 = vector.shape_cast %161 : vector<1x1x8x8xf32> to vector<8x8xf32>
    %cst_149 = arith.constant dense<0.000000e+00> : vector<8x512xf32>
    %163 = tpu.matmul %162, %160, %cst_149 {dimension_numbers = #tpu.dot_dimension_numbers<[1], [0], [0], [1], [0, 0, 1, 1], [], []>} : vector<8x8xf32>, vector<8x512xf32>, vector<8x512xf32> -> vector<8x512xf32>
    %164 = arith.addf %156, %163 : vector<8x512xf32>
    %c15_i32_150 = arith.constant 15 : i32
    %165 = tpu.dynamic_rotate %145 by %c15_i32_150 dim 1 : vector<8x512xf32>, i32 -> vector<8x512xf32>
    %c2_151 = arith.constant 2 : index
    %c0_152 = arith.constant 0 : index
    %166 = vector.load %arg6[%c2_151, %c0_152] : memref<9x512xf32, #tpu.memory_space<vmem>>, vector<1x512xf32>
    %167 = vector.broadcast %166 : vector<1x512xf32> to vector<8x512xf32>
    %168 = arith.mulf %165, %167 : vector<8x512xf32>
    %c1_153 = arith.constant 1 : index
    %c2_154 = arith.constant 2 : index
    %c0_155 = arith.constant 0 : index
    %c0_156 = arith.constant 0 : index
    %169 = vector.load %arg2[%c1_153, %c2_154, %c0_155, %c0_156] : memref<2x9x8x8xf32, #tpu.memory_space<vmem>>, vector<1x1x8x8xf32>
    %170 = vector.shape_cast %169 : vector<1x1x8x8xf32> to vector<8x8xf32>
    %cst_157 = arith.constant dense<0.000000e+00> : vector<8x512xf32>
    %171 = tpu.matmul %170, %168, %cst_157 {dimension_numbers = #tpu.dot_dimension_numbers<[1], [0], [0], [1], [0, 0, 1, 1], [], []>} : vector<8x8xf32>, vector<8x512xf32>, vector<8x512xf32> -> vector<8x512xf32>
    %172 = arith.addf %164, %171 : vector<8x512xf32>
    %c1_i32_158 = arith.constant 1 : i32
    %173 = tpu.dynamic_rotate %145 by %c1_i32_158 dim 1 : vector<8x512xf32>, i32 -> vector<8x512xf32>
    %c3_159 = arith.constant 3 : index
    %c0_160 = arith.constant 0 : index
    %174 = vector.load %arg6[%c3_159, %c0_160] : memref<9x512xf32, #tpu.memory_space<vmem>>, vector<1x512xf32>
    %175 = vector.broadcast %174 : vector<1x512xf32> to vector<8x512xf32>
    %176 = arith.mulf %173, %175 : vector<8x512xf32>
    %c1_161 = arith.constant 1 : index
    %c3_162 = arith.constant 3 : index
    %c0_163 = arith.constant 0 : index
    %c0_164 = arith.constant 0 : index
    %177 = vector.load %arg2[%c1_161, %c3_162, %c0_163, %c0_164] : memref<2x9x8x8xf32, #tpu.memory_space<vmem>>, vector<1x1x8x8xf32>
    %178 = vector.shape_cast %177 : vector<1x1x8x8xf32> to vector<8x8xf32>
    %cst_165 = arith.constant dense<0.000000e+00> : vector<8x512xf32>
    %179 = tpu.matmul %178, %176, %cst_165 {dimension_numbers = #tpu.dot_dimension_numbers<[1], [0], [0], [1], [0, 0, 1, 1], [], []>} : vector<8x8xf32>, vector<8x512xf32>, vector<8x512xf32> -> vector<8x512xf32>
    %180 = arith.addf %172, %179 : vector<8x512xf32>
    %c511_i32_166 = arith.constant 511 : i32
    %181 = tpu.dynamic_rotate %145 by %c511_i32_166 dim 1 : vector<8x512xf32>, i32 -> vector<8x512xf32>
    %c5_167 = arith.constant 5 : index
    %c0_168 = arith.constant 0 : index
    %182 = vector.load %arg6[%c5_167, %c0_168] : memref<9x512xf32, #tpu.memory_space<vmem>>, vector<1x512xf32>
    %183 = vector.broadcast %182 : vector<1x512xf32> to vector<8x512xf32>
    %184 = arith.mulf %181, %183 : vector<8x512xf32>
    %c1_169 = arith.constant 1 : index
    %c5_170 = arith.constant 5 : index
    %c0_171 = arith.constant 0 : index
    %c0_172 = arith.constant 0 : index
    %185 = vector.load %arg2[%c1_169, %c5_170, %c0_171, %c0_172] : memref<2x9x8x8xf32, #tpu.memory_space<vmem>>, vector<1x1x8x8xf32>
    %186 = vector.shape_cast %185 : vector<1x1x8x8xf32> to vector<8x8xf32>
    %cst_173 = arith.constant dense<0.000000e+00> : vector<8x512xf32>
    %187 = tpu.matmul %186, %184, %cst_173 {dimension_numbers = #tpu.dot_dimension_numbers<[1], [0], [0], [1], [0, 0, 1, 1], [], []>} : vector<8x8xf32>, vector<8x512xf32>, vector<8x512xf32> -> vector<8x512xf32>
    %188 = arith.addf %180, %187 : vector<8x512xf32>
    %c497_i32_174 = arith.constant 497 : i32
    %189 = tpu.dynamic_rotate %145 by %c497_i32_174 dim 1 : vector<8x512xf32>, i32 -> vector<8x512xf32>
    %c6_175 = arith.constant 6 : index
    %c0_176 = arith.constant 0 : index
    %190 = vector.load %arg6[%c6_175, %c0_176] : memref<9x512xf32, #tpu.memory_space<vmem>>, vector<1x512xf32>
    %191 = vector.broadcast %190 : vector<1x512xf32> to vector<8x512xf32>
    %192 = arith.mulf %189, %191 : vector<8x512xf32>
    %c1_177 = arith.constant 1 : index
    %c6_178 = arith.constant 6 : index
    %c0_179 = arith.constant 0 : index
    %c0_180 = arith.constant 0 : index
    %193 = vector.load %arg2[%c1_177, %c6_178, %c0_179, %c0_180] : memref<2x9x8x8xf32, #tpu.memory_space<vmem>>, vector<1x1x8x8xf32>
    %194 = vector.shape_cast %193 : vector<1x1x8x8xf32> to vector<8x8xf32>
    %cst_181 = arith.constant dense<0.000000e+00> : vector<8x512xf32>
    %195 = tpu.matmul %194, %192, %cst_181 {dimension_numbers = #tpu.dot_dimension_numbers<[1], [0], [0], [1], [0, 0, 1, 1], [], []>} : vector<8x8xf32>, vector<8x512xf32>, vector<8x512xf32> -> vector<8x512xf32>
    %196 = arith.addf %188, %195 : vector<8x512xf32>
    %c496_i32_182 = arith.constant 496 : i32
    %197 = tpu.dynamic_rotate %145 by %c496_i32_182 dim 1 : vector<8x512xf32>, i32 -> vector<8x512xf32>
    %c7_183 = arith.constant 7 : index
    %c0_184 = arith.constant 0 : index
    %198 = vector.load %arg6[%c7_183, %c0_184] : memref<9x512xf32, #tpu.memory_space<vmem>>, vector<1x512xf32>
    %199 = vector.broadcast %198 : vector<1x512xf32> to vector<8x512xf32>
    %200 = arith.mulf %197, %199 : vector<8x512xf32>
    %c1_185 = arith.constant 1 : index
    %c7_186 = arith.constant 7 : index
    %c0_187 = arith.constant 0 : index
    %c0_188 = arith.constant 0 : index
    %201 = vector.load %arg2[%c1_185, %c7_186, %c0_187, %c0_188] : memref<2x9x8x8xf32, #tpu.memory_space<vmem>>, vector<1x1x8x8xf32>
    %202 = vector.shape_cast %201 : vector<1x1x8x8xf32> to vector<8x8xf32>
    %cst_189 = arith.constant dense<0.000000e+00> : vector<8x512xf32>
    %203 = tpu.matmul %202, %200, %cst_189 {dimension_numbers = #tpu.dot_dimension_numbers<[1], [0], [0], [1], [0, 0, 1, 1], [], []>} : vector<8x8xf32>, vector<8x512xf32>, vector<8x512xf32> -> vector<8x512xf32>
    %204 = arith.addf %196, %203 : vector<8x512xf32>
    %c495_i32_190 = arith.constant 495 : i32
    %205 = tpu.dynamic_rotate %145 by %c495_i32_190 dim 1 : vector<8x512xf32>, i32 -> vector<8x512xf32>
    %c8_191 = arith.constant 8 : index
    %c0_192 = arith.constant 0 : index
    %206 = vector.load %arg6[%c8_191, %c0_192] : memref<9x512xf32, #tpu.memory_space<vmem>>, vector<1x512xf32>
    %207 = vector.broadcast %206 : vector<1x512xf32> to vector<8x512xf32>
    %208 = arith.mulf %205, %207 : vector<8x512xf32>
    %c1_193 = arith.constant 1 : index
    %c8_194 = arith.constant 8 : index
    %c0_195 = arith.constant 0 : index
    %c0_196 = arith.constant 0 : index
    %209 = vector.load %arg2[%c1_193, %c8_194, %c0_195, %c0_196] : memref<2x9x8x8xf32, #tpu.memory_space<vmem>>, vector<1x1x8x8xf32>
    %210 = vector.shape_cast %209 : vector<1x1x8x8xf32> to vector<8x8xf32>
    %cst_197 = arith.constant dense<0.000000e+00> : vector<8x512xf32>
    %211 = tpu.matmul %210, %208, %cst_197 {dimension_numbers = #tpu.dot_dimension_numbers<[1], [0], [0], [1], [0, 0, 1, 1], [], []>} : vector<8x8xf32>, vector<8x512xf32>, vector<8x512xf32> -> vector<8x512xf32>
    %212 = arith.addf %204, %211 : vector<8x512xf32>
    %c1_198 = arith.constant 1 : index
    %c0_199 = arith.constant 0 : index
    %c0_200 = arith.constant 0 : index
    %213 = vector.load %arg3[%c1_198, %c0_199, %c0_200] : memref<2x8x1xf32, #tpu.memory_space<vmem>>, vector<1x8x1xf32>
    %214 = vector.shape_cast %213 : vector<1x8x1xf32> to vector<8x1xf32>
    %215 = vector.broadcast %214 : vector<8x1xf32> to vector<8x512xf32>
    %216 = arith.addf %212, %215 : vector<8x512xf32>
    %cst_201 = arith.constant 0.000000e+00 : f32
    %217 = vector.broadcast %cst_201 : f32 to vector<8x512xf32>
    %218 = arith.maximumf %216, %217 : vector<8x512xf32>
    %c1_202 = arith.constant 1 : index
    %c4_203 = arith.constant 4 : index
    %c0_204 = arith.constant 0 : index
    %c0_205 = arith.constant 0 : index
    %219 = vector.load %arg4[%c1_202, %c4_203, %c0_204, %c0_205] : memref<2x9x8x8xf32, #tpu.memory_space<vmem>>, vector<1x1x8x8xf32>
    %220 = vector.shape_cast %219 : vector<1x1x8x8xf32> to vector<8x8xf32>
    %cst_206 = arith.constant dense<0.000000e+00> : vector<8x512xf32>
    %221 = tpu.matmul %220, %218, %cst_206 {dimension_numbers = #tpu.dot_dimension_numbers<[1], [0], [0], [1], [0, 0, 1, 1], [], []>} : vector<8x8xf32>, vector<8x512xf32>, vector<8x512xf32> -> vector<8x512xf32>
    %c17_i32_207 = arith.constant 17 : i32
    %222 = tpu.dynamic_rotate %218 by %c17_i32_207 dim 1 : vector<8x512xf32>, i32 -> vector<8x512xf32>
    %c0_208 = arith.constant 0 : index
    %c0_209 = arith.constant 0 : index
    %223 = vector.load %arg6[%c0_208, %c0_209] : memref<9x512xf32, #tpu.memory_space<vmem>>, vector<1x512xf32>
    %224 = vector.broadcast %223 : vector<1x512xf32> to vector<8x512xf32>
    %225 = arith.mulf %222, %224 : vector<8x512xf32>
    %c1_210 = arith.constant 1 : index
    %c0_211 = arith.constant 0 : index
    %c0_212 = arith.constant 0 : index
    %c0_213 = arith.constant 0 : index
    %226 = vector.load %arg4[%c1_210, %c0_211, %c0_212, %c0_213] : memref<2x9x8x8xf32, #tpu.memory_space<vmem>>, vector<1x1x8x8xf32>
    %227 = vector.shape_cast %226 : vector<1x1x8x8xf32> to vector<8x8xf32>
    %cst_214 = arith.constant dense<0.000000e+00> : vector<8x512xf32>
    %228 = tpu.matmul %227, %225, %cst_214 {dimension_numbers = #tpu.dot_dimension_numbers<[1], [0], [0], [1], [0, 0, 1, 1], [], []>} : vector<8x8xf32>, vector<8x512xf32>, vector<8x512xf32> -> vector<8x512xf32>
    %229 = arith.addf %221, %228 : vector<8x512xf32>
    %c16_i32_215 = arith.constant 16 : i32
    %230 = tpu.dynamic_rotate %218 by %c16_i32_215 dim 1 : vector<8x512xf32>, i32 -> vector<8x512xf32>
    %c1_216 = arith.constant 1 : index
    %c0_217 = arith.constant 0 : index
    %231 = vector.load %arg6[%c1_216, %c0_217] : memref<9x512xf32, #tpu.memory_space<vmem>>, vector<1x512xf32>
    %232 = vector.broadcast %231 : vector<1x512xf32> to vector<8x512xf32>
    %233 = arith.mulf %230, %232 : vector<8x512xf32>
    %c1_218 = arith.constant 1 : index
    %c1_219 = arith.constant 1 : index
    %c0_220 = arith.constant 0 : index
    %c0_221 = arith.constant 0 : index
    %234 = vector.load %arg4[%c1_218, %c1_219, %c0_220, %c0_221] : memref<2x9x8x8xf32, #tpu.memory_space<vmem>>, vector<1x1x8x8xf32>
    %235 = vector.shape_cast %234 : vector<1x1x8x8xf32> to vector<8x8xf32>
    %cst_222 = arith.constant dense<0.000000e+00> : vector<8x512xf32>
    %236 = tpu.matmul %235, %233, %cst_222 {dimension_numbers = #tpu.dot_dimension_numbers<[1], [0], [0], [1], [0, 0, 1, 1], [], []>} : vector<8x8xf32>, vector<8x512xf32>, vector<8x512xf32> -> vector<8x512xf32>
    %237 = arith.addf %229, %236 : vector<8x512xf32>
    %c15_i32_223 = arith.constant 15 : i32
    %238 = tpu.dynamic_rotate %218 by %c15_i32_223 dim 1 : vector<8x512xf32>, i32 -> vector<8x512xf32>
    %c2_224 = arith.constant 2 : index
    %c0_225 = arith.constant 0 : index
    %239 = vector.load %arg6[%c2_224, %c0_225] : memref<9x512xf32, #tpu.memory_space<vmem>>, vector<1x512xf32>
    %240 = vector.broadcast %239 : vector<1x512xf32> to vector<8x512xf32>
    %241 = arith.mulf %238, %240 : vector<8x512xf32>
    %c1_226 = arith.constant 1 : index
    %c2_227 = arith.constant 2 : index
    %c0_228 = arith.constant 0 : index
    %c0_229 = arith.constant 0 : index
    %242 = vector.load %arg4[%c1_226, %c2_227, %c0_228, %c0_229] : memref<2x9x8x8xf32, #tpu.memory_space<vmem>>, vector<1x1x8x8xf32>
    %243 = vector.shape_cast %242 : vector<1x1x8x8xf32> to vector<8x8xf32>
    %cst_230 = arith.constant dense<0.000000e+00> : vector<8x512xf32>
    %244 = tpu.matmul %243, %241, %cst_230 {dimension_numbers = #tpu.dot_dimension_numbers<[1], [0], [0], [1], [0, 0, 1, 1], [], []>} : vector<8x8xf32>, vector<8x512xf32>, vector<8x512xf32> -> vector<8x512xf32>
    %245 = arith.addf %237, %244 : vector<8x512xf32>
    %c1_i32_231 = arith.constant 1 : i32
    %246 = tpu.dynamic_rotate %218 by %c1_i32_231 dim 1 : vector<8x512xf32>, i32 -> vector<8x512xf32>
    %c3_232 = arith.constant 3 : index
    %c0_233 = arith.constant 0 : index
    %247 = vector.load %arg6[%c3_232, %c0_233] : memref<9x512xf32, #tpu.memory_space<vmem>>, vector<1x512xf32>
    %248 = vector.broadcast %247 : vector<1x512xf32> to vector<8x512xf32>
    %249 = arith.mulf %246, %248 : vector<8x512xf32>
    %c1_234 = arith.constant 1 : index
    %c3_235 = arith.constant 3 : index
    %c0_236 = arith.constant 0 : index
    %c0_237 = arith.constant 0 : index
    %250 = vector.load %arg4[%c1_234, %c3_235, %c0_236, %c0_237] : memref<2x9x8x8xf32, #tpu.memory_space<vmem>>, vector<1x1x8x8xf32>
    %251 = vector.shape_cast %250 : vector<1x1x8x8xf32> to vector<8x8xf32>
    %cst_238 = arith.constant dense<0.000000e+00> : vector<8x512xf32>
    %252 = tpu.matmul %251, %249, %cst_238 {dimension_numbers = #tpu.dot_dimension_numbers<[1], [0], [0], [1], [0, 0, 1, 1], [], []>} : vector<8x8xf32>, vector<8x512xf32>, vector<8x512xf32> -> vector<8x512xf32>
    %253 = arith.addf %245, %252 : vector<8x512xf32>
    %c511_i32_239 = arith.constant 511 : i32
    %254 = tpu.dynamic_rotate %218 by %c511_i32_239 dim 1 : vector<8x512xf32>, i32 -> vector<8x512xf32>
    %c5_240 = arith.constant 5 : index
    %c0_241 = arith.constant 0 : index
    %255 = vector.load %arg6[%c5_240, %c0_241] : memref<9x512xf32, #tpu.memory_space<vmem>>, vector<1x512xf32>
    %256 = vector.broadcast %255 : vector<1x512xf32> to vector<8x512xf32>
    %257 = arith.mulf %254, %256 : vector<8x512xf32>
    %c1_242 = arith.constant 1 : index
    %c5_243 = arith.constant 5 : index
    %c0_244 = arith.constant 0 : index
    %c0_245 = arith.constant 0 : index
    %258 = vector.load %arg4[%c1_242, %c5_243, %c0_244, %c0_245] : memref<2x9x8x8xf32, #tpu.memory_space<vmem>>, vector<1x1x8x8xf32>
    %259 = vector.shape_cast %258 : vector<1x1x8x8xf32> to vector<8x8xf32>
    %cst_246 = arith.constant dense<0.000000e+00> : vector<8x512xf32>
    %260 = tpu.matmul %259, %257, %cst_246 {dimension_numbers = #tpu.dot_dimension_numbers<[1], [0], [0], [1], [0, 0, 1, 1], [], []>} : vector<8x8xf32>, vector<8x512xf32>, vector<8x512xf32> -> vector<8x512xf32>
    %261 = arith.addf %253, %260 : vector<8x512xf32>
    %c497_i32_247 = arith.constant 497 : i32
    %262 = tpu.dynamic_rotate %218 by %c497_i32_247 dim 1 : vector<8x512xf32>, i32 -> vector<8x512xf32>
    %c6_248 = arith.constant 6 : index
    %c0_249 = arith.constant 0 : index
    %263 = vector.load %arg6[%c6_248, %c0_249] : memref<9x512xf32, #tpu.memory_space<vmem>>, vector<1x512xf32>
    %264 = vector.broadcast %263 : vector<1x512xf32> to vector<8x512xf32>
    %265 = arith.mulf %262, %264 : vector<8x512xf32>
    %c1_250 = arith.constant 1 : index
    %c6_251 = arith.constant 6 : index
    %c0_252 = arith.constant 0 : index
    %c0_253 = arith.constant 0 : index
    %266 = vector.load %arg4[%c1_250, %c6_251, %c0_252, %c0_253] : memref<2x9x8x8xf32, #tpu.memory_space<vmem>>, vector<1x1x8x8xf32>
    %267 = vector.shape_cast %266 : vector<1x1x8x8xf32> to vector<8x8xf32>
    %cst_254 = arith.constant dense<0.000000e+00> : vector<8x512xf32>
    %268 = tpu.matmul %267, %265, %cst_254 {dimension_numbers = #tpu.dot_dimension_numbers<[1], [0], [0], [1], [0, 0, 1, 1], [], []>} : vector<8x8xf32>, vector<8x512xf32>, vector<8x512xf32> -> vector<8x512xf32>
    %269 = arith.addf %261, %268 : vector<8x512xf32>
    %c496_i32_255 = arith.constant 496 : i32
    %270 = tpu.dynamic_rotate %218 by %c496_i32_255 dim 1 : vector<8x512xf32>, i32 -> vector<8x512xf32>
    %c7_256 = arith.constant 7 : index
    %c0_257 = arith.constant 0 : index
    %271 = vector.load %arg6[%c7_256, %c0_257] : memref<9x512xf32, #tpu.memory_space<vmem>>, vector<1x512xf32>
    %272 = vector.broadcast %271 : vector<1x512xf32> to vector<8x512xf32>
    %273 = arith.mulf %270, %272 : vector<8x512xf32>
    %c1_258 = arith.constant 1 : index
    %c7_259 = arith.constant 7 : index
    %c0_260 = arith.constant 0 : index
    %c0_261 = arith.constant 0 : index
    %274 = vector.load %arg4[%c1_258, %c7_259, %c0_260, %c0_261] : memref<2x9x8x8xf32, #tpu.memory_space<vmem>>, vector<1x1x8x8xf32>
    %275 = vector.shape_cast %274 : vector<1x1x8x8xf32> to vector<8x8xf32>
    %cst_262 = arith.constant dense<0.000000e+00> : vector<8x512xf32>
    %276 = tpu.matmul %275, %273, %cst_262 {dimension_numbers = #tpu.dot_dimension_numbers<[1], [0], [0], [1], [0, 0, 1, 1], [], []>} : vector<8x8xf32>, vector<8x512xf32>, vector<8x512xf32> -> vector<8x512xf32>
    %277 = arith.addf %269, %276 : vector<8x512xf32>
    %c495_i32_263 = arith.constant 495 : i32
    %278 = tpu.dynamic_rotate %218 by %c495_i32_263 dim 1 : vector<8x512xf32>, i32 -> vector<8x512xf32>
    %c8_264 = arith.constant 8 : index
    %c0_265 = arith.constant 0 : index
    %279 = vector.load %arg6[%c8_264, %c0_265] : memref<9x512xf32, #tpu.memory_space<vmem>>, vector<1x512xf32>
    %280 = vector.broadcast %279 : vector<1x512xf32> to vector<8x512xf32>
    %281 = arith.mulf %278, %280 : vector<8x512xf32>
    %c1_266 = arith.constant 1 : index
    %c8_267 = arith.constant 8 : index
    %c0_268 = arith.constant 0 : index
    %c0_269 = arith.constant 0 : index
    %282 = vector.load %arg4[%c1_266, %c8_267, %c0_268, %c0_269] : memref<2x9x8x8xf32, #tpu.memory_space<vmem>>, vector<1x1x8x8xf32>
    %283 = vector.shape_cast %282 : vector<1x1x8x8xf32> to vector<8x8xf32>
    %cst_270 = arith.constant dense<0.000000e+00> : vector<8x512xf32>
    %284 = tpu.matmul %283, %281, %cst_270 {dimension_numbers = #tpu.dot_dimension_numbers<[1], [0], [0], [1], [0, 0, 1, 1], [], []>} : vector<8x8xf32>, vector<8x512xf32>, vector<8x512xf32> -> vector<8x512xf32>
    %285 = arith.addf %277, %284 : vector<8x512xf32>
    %c1_271 = arith.constant 1 : index
    %c0_272 = arith.constant 0 : index
    %c0_273 = arith.constant 0 : index
    %286 = vector.load %arg5[%c1_271, %c0_272, %c0_273] : memref<2x8x1xf32, #tpu.memory_space<vmem>>, vector<1x8x1xf32>
    %287 = vector.shape_cast %286 : vector<1x8x1xf32> to vector<8x1xf32>
    %288 = vector.broadcast %287 : vector<8x1xf32> to vector<8x512xf32>
    %289 = arith.addf %285, %288 : vector<8x512xf32>
    %290 = arith.addf %145, %289 : vector<8x512xf32>
    %c0_274 = arith.constant 0 : index
    %c0_275 = arith.constant 0 : index
    %291 = vector.load %arg7[%c0_274, %c0_275] : memref<8x512xf32, #tpu.memory_space<vmem>>, vector<8x512xf32>
    tpu.vector_store %arg7[%c0_274, %c0_275], %290 {strides = array<i32>} : memref<8x512xf32, #tpu.memory_space<vmem>>, vector<8x512xf32>,
    return
  }
  func.func @transform_0(%arg0: i32) -> (i32, i32) {
    %c0_i32 = arith.constant 0 : i32
    %c0_i32_0 = arith.constant 0 : i32
    return %c0_i32, %arg0 : i32, i32
  }
  func.func @transform_1(%arg0: i32) -> (i32, i32, i32, i32) {
    %c0_i32 = arith.constant 0 : i32
    %c0_i32_0 = arith.constant 0 : i32
    %c0_i32_1 = arith.constant 0 : i32
    %c0_i32_2 = arith.constant 0 : i32
    %c0_i32_3 = arith.constant 0 : i32
    return %c0_i32, %c0_i32_0, %c0_i32_1, %c0_i32_2 : i32, i32, i32, i32
  }
  func.func @transform_2(%arg0: i32) -> (i32, i32, i32) {
    %c0_i32 = arith.constant 0 : i32
    %c0_i32_0 = arith.constant 0 : i32
    %c0_i32_1 = arith.constant 0 : i32
    %c0_i32_2 = arith.constant 0 : i32
    return %c0_i32, %c0_i32_0, %c0_i32_1 : i32, i32, i32
  }
  func.func @transform_3(%arg0: i32) -> (i32, i32, i32, i32) {
    %c0_i32 = arith.constant 0 : i32
    %c0_i32_0 = arith.constant 0 : i32
    %c0_i32_1 = arith.constant 0 : i32
    %c0_i32_2 = arith.constant 0 : i32
    %c0_i32_3 = arith.constant 0 : i32
    return %c0_i32, %c0_i32_0, %c0_i32_1, %c0_i32_2 : i32, i32, i32, i32
  }
  func.func @transform_4(%arg0: i32) -> (i32, i32, i32) {
    %c0_i32 = arith.constant 0 : i32
    %c0_i32_0 = arith.constant 0 : i32
    %c0_i32_1 = arith.constant 0 : i32
    %c0_i32_2 = arith.constant 0 : i32
    return %c0_i32, %c0_i32_0, %c0_i32_1 : i32, i32, i32
  }
  func.func @transform_5(%arg0: i32) -> (i32, i32) {
    %c0_i32 = arith.constant 0 : i32
    %c0_i32_0 = arith.constant 0 : i32
    %c0_i32_1 = arith.constant 0 : i32
    return %c0_i32, %c0_i32_0 : i32, i32
  }
  func.func @transform_6(%arg0: i32) -> (i32, i32) {
    %c0_i32 = arith.constant 0 : i32
    %c0_i32_0 = arith.constant 0 : i32
    return %c0_i32, %arg0 : i32, i32
  }
}

</mosaic_0001>

<bundles_post_ra>
// kernel: residual_block_module_forward.1
= control target key start
LH: loop header
LB: loop body
LE: loop exit
PB: predicated region body
PF: predicated region fallthrough
CT: control target
= control target key end

     0   :  { %v6460_v2 = vmov 0.0   ;;  %s6461_s25 = smov 17   ;;  %s6462_s30 = smov 16   ;;  %v6469_v5 = vmov 0   ;;  %v37_v7 = vlaneseq  ;;  %vm71_vm2 = vcmask 64512   ;;  %s7580_s0 = inlined_call_operand.vmem [shape: f32[8,512], index: 0, kind: input, shape index: {}]   ;;  %s7581_s2 = inlined_call_operand.vmem [shape: f32[2,8,1], index: 2, kind: input, shape index: {}]   ;;  %s7582_s5 = inlined_call_operand.vmem [shape: f32[9,512], index: 5, kind: input, shape index: {}]   ;;  %s7583_s1 = inlined_call_operand.vmem [shape: f32[2,9,8,8], index: 1, kind: input, shape index: {}]   ;;  %s7584_s4 = inlined_call_operand.vmem [shape: f32[2,8,1], index: 4, kind: input, shape index: {}]   ;;  %s7585_s3 = inlined_call_operand.vmem [shape: f32[2,9,8,8], index: 3, kind: input, shape index: {}]   ;;  %s7586_s6 = inlined_call_operand.vmem [shape: f32[8,512], index: 6, kind: output, shape index: {}]  }
   0x1   :  { %v6508_v0 = vld [vmem:[%s7580_s0 + $0x10] sm:$0xff]  ;;  %v6513_v1 = vld [vmem:[%s7580_s0] sm:$0xff]  ;;  %139 = vmatprep.mubr.f32.mxu0 %v6460_v2  ;;  %210 = vmatprep.mubr.f32.mxu1 %v6460_v2  ;;  %v6524_v3 = vld [vmem:[%s7580_s0 + $0x18] sm:$0xff]  ;;  %s6463_s7 = smov 15   ;;  %s6464_s8 = smov 1  }
   0x2   :  { %33 = vrot.lane.b32.xlu1 %v6508_v0, %s6461_s25  ;;  %29 = vrot.lane.b32.xlu0 %v6513_v1, %s6461_s25  ;;  %v6529_v4 = vld [vmem:[%s7580_s0 + $0x8] sm:$0xff]  ;;  %s6465_s9 = smov 127   ;;  %s6466_s10 = smov 113   ;;  %v1699_v6 = vld [vmem:[%s7581_s2] sm:$0xff]  ;;  %v47_v8 = vshrl.u32 %v37_v7, 7  ;;  %v6594_v9 = vand.u32 127, %v37_v7 }
   0x3   :  { %s6467_s11 = smov 112   ;;  %s6468_s12 = smov 111   ;;  %6454 = vset.pattern.permute.xlu0 %v6469_v5  ;;  %6455 = vset.pattern.permute.xlu1 %v6469_v5  ;;  %v44_v14 = vld [vmem:[%s7582_s5] ss:$8 sm:$0xf] }
   0x4   :  { %v6596_v10 = vsub.s32 3, %v47_v8  ;;  %v6598_v11 = vsub.s32 1, %v47_v8  ;;  %v6600_v12 = vsub.s32 0, %v47_v8  ;;  %v6602_v13 = vsub.s32 2, %v47_v8  ;;  %v70_v33 = vld [vmem:[%s7583_s1] sm:$0xff] }
   0x5   :  { %vm39_vm0 = vcmp.lt.s32.totalorder %v6594_v9, 17  ;;  %v6206_v17 = vld [vmem:[%s7582_s5 + $0x1] ss:$8 sm:$0xf]  ;;  %vm370_vm1 = vcmp.lt.s32.totalorder %v6594_v9, 16  ;;  %vm561_vm3 = vcmp.lt.s32.totalorder %v6594_v9, 15 }
   0x6   :  { %35 = vrot.lane.b32.xlu1 %v6524_v3, %s6461_s25  ;;  %31 = vrot.lane.b32.xlu0 %v6529_v4, %s6461_s25  ;;  %v6612_v18 = vrot.slane %v44_v14, %v6596_v10  ;;  %v6615_v19 = vrot.slane %v44_v14, %v6598_v11  ;;  %v6618_v20 = vrot.slane %v44_v14, %v6600_v12  ;;  %v6210_v41 = vld [vmem:[%s7582_s5 + $0x2] ss:$8 sm:$0xf]  ;;  %v6214_v59 = vld [vmem:[%s7582_s5 + $0x3] ss:$8 sm:$0xf] }
   0x7   :  { %v6621_v21 = vrot.slane %v44_v14, %v6602_v13  ;;  %v6625_v24 = vrot.slane %v6206_v17, %v6598_v11  ;;  %v6648_v38 = vrot.slane %v6206_v17, %v6596_v10  ;;  %v6651_v39 = vrot.slane %v6206_v17, %v6600_v12  ;;  %v6201_v51 = vld [vmem:[%s7583_s1 + $0x20] sm:$0xff] }
   0x8   :  { %v6655_v40 = vrot.slane %v6206_v17, %v6602_v13  ;;  %v6674_v48 = vrot.slane %v6210_v41, %v6598_v11  ;;  %v6687_v56 = vrot.slane %v6210_v41, %v6596_v10  ;;  %v6690_v57 = vrot.slane %v6210_v41, %v6600_v12 }
   0x9   :  { %v6693_v58 = vrot.slane %v6210_v41, %v6602_v13  ;;  %vm752_vm4 = vcmp.lt.s32.totalorder %v6594_v9, 1  ;;  %v6725_v17 = vrot.slane %v6214_v59, %v6600_v12  ;;  %vm943_vm5 = vcmp.lt.s32.totalorder %v6594_v9, 127 }
   0xa   :  { %364 = vrot.lane.b32.xlu1 %v6529_v4, %s6462_s30  ;;  %362 = vrot.lane.b32.xlu0 %v6513_v1, %s6462_s30  ;;  %vm1134_vm6 = vcmp.lt.s32.totalorder %v6594_v9, 113  ;;  %vm1325_vm7 = vcmp.lt.s32.totalorder %v6594_v9, 112  ;;  %vm1516_vm8 = vcmp.lt.s32.totalorder %v6594_v9, 111  ;;  %v6312_v9 = vld [vmem:[%s7585_s3 + $0x88] sm:$0xff] }
   0xe   :  { %368 = vrot.lane.b32.xlu1 %v6524_v3, %s6462_s30  ;;  %366 = vrot.lane.b32.xlu0 %v6508_v0, %s6462_s30 }
  0x12   :  { %555 = vrot.lane.b32.xlu1 %v6529_v4, %s6463_s7  ;;  %553 = vrot.lane.b32.xlu0 %v6513_v1, %s6463_s7 }
  0x16   :  { %559 = vrot.lane.b32.xlu1 %v6524_v3, %s6463_s7  ;;  %557 = vrot.lane.b32.xlu0 %v6508_v0, %s6463_s7 }
  0x1a   :  { %746 = vrot.lane.b32.xlu1 %v6529_v4, %s6464_s8  ;;  %744 = vrot.lane.b32.xlu0 %v6513_v1, %s6464_s8 }
  0x1e   :  { %750 = vrot.lane.b32.xlu1 %v6524_v3, %s6464_s8  ;;  %748 = vrot.lane.b32.xlu0 %v6508_v0, %s6464_s8 }
  0x22   :  { %937 = vrot.lane.b32.xlu1 %v6529_v4, %s6465_s9  ;;  %935 = vrot.lane.b32.xlu0 %v6513_v1, %s6465_s9 }
  0x26   :  { %941 = vrot.lane.b32.xlu1 %v6524_v3, %s6465_s9  ;;  %939 = vrot.lane.b32.xlu0 %v6508_v0, %s6465_s9 }
  0x2a   :  { %1128 = vrot.lane.b32.xlu1 %v6529_v4, %s6466_s10  ;;  %1126 = vrot.lane.b32.xlu0 %v6513_v1, %s6466_s10 }
  0x2e   :  { %1132 = vrot.lane.b32.xlu1 %v6524_v3, %s6466_s10  ;;  %1130 = vrot.lane.b32.xlu0 %v6508_v0, %s6466_s10 }
  0x32   :  { %1319 = vrot.lane.b32.xlu1 %v6529_v4, %s6467_s11  ;;  %1317 = vrot.lane.b32.xlu0 %v6513_v1, %s6467_s11 }
  0x36   :  { %1323 = vrot.lane.b32.xlu1 %v6524_v3, %s6467_s11  ;;  %1321 = vrot.lane.b32.xlu0 %v6508_v0, %s6467_s11 }
  0x3a   :  { %1510 = vrot.lane.b32.xlu1 %v6529_v4, %s6468_s12  ;;  %1508 = vrot.lane.b32.xlu0 %v6513_v1, %s6468_s12 }
  0x3e   :  { %1514 = vrot.lane.b32.xlu1 %v6524_v3, %s6468_s12  ;;  %1512 = vrot.lane.b32.xlu0 %v6508_v0, %s6468_s12 }
  0x42   :  { %1702 = vperm.xlu0 %6454, %v1699_v6   ;;  %v6207_v6 = vld [vmem:[%s7583_s1 + $0x8] sm:$0xff] }
  0x74   :  { %v34_v15 = vpop.permute.xlu1 %33  ;;  %v30_v16 = vpop.permute.xlu0 %29 }
  0x78   :  { %v36_v22 = vpop.permute.xlu1 %35  ;;  %v32_v23 = vpop.permute.xlu0 %31 }
  0x79   :  { %v40_v25 = vsel %vm39_vm0, %v34_v15, %v36_v22  ;;  %v42_v26 = vsel %vm39_vm0, %v30_v16, %v32_v23  ;;  %v43_v27 = vsel %vm39_vm0, %v36_v22, %v30_v16  ;;  %v41_v28 = vsel %vm39_vm0, %v32_v23, %v34_v15 }
  0x7a   :  { %v69_v29 = vmul.f32 %v6612_v18, %v40_v25  ;;  %v67_v30 = vmul.f32 %v6615_v19, %v42_v26  ;;  %v66_v31 = vmul.f32 %v6618_v20, %v43_v27  ;;  %v68_v32 = vmul.f32 %v6621_v21, %v41_v28 }
  0x7b   :  { %v6722_v16 = vrot.slane %v6214_v59, %v6596_v10  ;;  %v6728_v22 = vrot.slane %v6214_v59, %v6602_v13 }
  0x7c   :  { %146 = vmatprep.subr.mxu1 %v69_v29  ;;  %v365_v34 = vpop.permute.xlu1 %364  ;;  %75 = vmatprep.subr.mxu0 %v67_v30  ;;  %v363_v35 = vpop.permute.xlu0 %362 }
  0x7d   :  { %76 = vmatpush1.msra.mxu0 %v66_v31  ;;  %147 = vmatpush1.msra.mxu1 %v68_v32  ;;  %v373_v36 = vsel %vm370_vm1, %v363_v35, %v365_v34  ;;  %v6218_v32 = vld [vmem:[%s7582_s5 + $0x5] ss:$8 sm:$0xf] }
  0x7e   :  { %6202 = vmatmul.mubr.msk.f32.vlgmr.msra.gmra.mrb[0].mxu0 %vm71_vm2, %v70_v33  ;;  %6203 = vmatmul.mubr.msk.f32.vlgmr.msra.gmra.mrb[0].mxu1 %vm71_vm2, %v70_v33  ;;  %v399_v37 = vmul.f32 %v6625_v24, %v373_v36  ;;  %v6211_v33 = vld [vmem:[%s7583_s1 + $0x10] sm:$0xff]  ;;  %v6751_v36 = vrot.slane %v6218_v32, %v6596_v10  ;;  %v6757_v41 = vrot.slane %v6218_v32, %v6600_v12 }
  0x7f   :  { %220 = vmatprep.subr.mxu0 %v6529_v4  ;;  %291 = vmatprep.subr.mxu1 %v6524_v3  ;;  %v6709_v3 = vrot.slane %v6214_v59, %v6598_v11 }
  0x80   :  { %v369_v42 = vpop.permute.xlu1 %368  ;;  %221 = vmatpush1.msra.mxu0 %v6513_v1  ;;  %v367_v43 = vpop.permute.xlu0 %366  ;;  %292 = vmatpush1.msra.mxu1 %v6508_v0 }
  0x81   :  { %v374_v44 = vsel %vm370_vm1, %v369_v42, %v363_v35  ;;  %v371_v45 = vsel %vm370_vm1, %v367_v43, %v369_v42  ;;  %v372_v46 = vsel %vm370_vm1, %v365_v34, %v367_v43  ;;  %407 = vmatprep.subr.mxu0 %v399_v37  ;;  %284 = vmatprep.mubr.f32.mxu0 %v6460_v2 }
  0x82   :  { %355 = vmatprep.mubr.f32.mxu1 %v6460_v2  ;;  %v401_v47 = vmul.f32 %v6648_v38, %v371_v45  ;;  %v398_v49 = vmul.f32 %v6651_v39, %v374_v44  ;;  %v400_v50 = vmul.f32 %v6655_v40, %v372_v46  ;;  %v6754_v37 = vrot.slane %v6218_v32, %v6598_v11 }
  0x83   :  { %v6760_v42 = vrot.slane %v6218_v32, %v6602_v13 }
  0x84   :  { %v556_v52 = vpop.permute.xlu1 %555  ;;  %478 = vmatprep.subr.mxu1 %v401_v47  ;;  %v554_v53 = vpop.permute.xlu0 %553 }
  0x85   :  { %v564_v54 = vsel %vm561_vm3, %v554_v53, %v556_v52 }
  0x86   :  { %6204 = vmatmul.mubr.msk.f32.vlgmr.msra.gmra.mrb[0].mxu0 %vm71_vm2, %v6201_v51  ;;  %6205 = vmatmul.mubr.msk.f32.vlgmr.msra.gmra.mrb[0].mxu1 %vm71_vm2, %v6201_v51  ;;  %v590_v55 = vmul.f32 %v6674_v48, %v564_v54  ;;  %v6222_v54 = vld [vmem:[%s7582_s5 + $0x6] ss:$8 sm:$0xf] }
  0x87   :  { %408 = vmatpush1.msra.mxu0 %v398_v49  ;;  %479 = vmatpush1.msra.mxu1 %v400_v50 }
  0x88   :  { %v560_v60 = vpop.permute.xlu1 %559  ;;  %v558_v61 = vpop.permute.xlu0 %557  ;;  %598 = vmatprep.subr.mxu0 %v590_v55  ;;  %471 = vmatprep.mubr.f32.mxu0 %v6460_v2  ;;  %v6215_v55 = vld [vmem:[%s7583_s1 + $0x18] sm:$0xff] }
  0x89   :  { %v565_v62 = vsel %vm561_vm3, %v560_v60, %v554_v53  ;;  %v562_v63 = vsel %vm561_vm3, %v558_v61, %v560_v60  ;;  %v563_v0 = vsel %vm561_vm3, %v556_v52, %v558_v61  ;;  %542 = vmatprep.mubr.f32.mxu1 %v6460_v2  ;;  %v6786_v61 = vrot.slane %v6222_v54, %v6596_v10 }
  0x8a   :  { %v592_v1 = vmul.f32 %v6687_v56, %v562_v63  ;;  %v589_v4 = vmul.f32 %v6690_v57, %v565_v62  ;;  %v591_v5 = vmul.f32 %v6693_v58, %v563_v0  ;;  %v6789_v62 = vrot.slane %v6222_v54, %v6598_v11 }
  0x8b   :  { %v6792_v63 = vrot.slane %v6222_v54, %v6600_v12  ;;  %v6795_v0 = vrot.slane %v6222_v54, %v6602_v13 }
  0x8c   :  { %v747_v7 = vpop.permute.xlu1 %746  ;;  %669 = vmatprep.subr.mxu1 %v592_v1  ;;  %v745_v8 = vpop.permute.xlu0 %744 }
  0x8d   :  { %v755_v14 = vsel %vm752_vm4, %v745_v8, %v747_v7 }
  0x8e   :  { %6208 = vmatmul.mubr.msk.f32.vlgmr.msra.gmra.mrb[0].mxu0 %vm71_vm2, %v6207_v6  ;;  %6209 = vmatmul.mubr.msk.f32.vlgmr.msra.gmra.mrb[0].mxu1 %vm71_vm2, %v6207_v6  ;;  %v781_v15 = vmul.f32 %v6709_v3, %v755_v14 }
  0x8f   :  { %599 = vmatpush1.msra.mxu0 %v589_v4  ;;  %670 = vmatpush1.msra.mxu1 %v591_v5 }
  0x90   :  { %v751_v23 = vpop.permute.xlu1 %750  ;;  %v749_v25 = vpop.permute.xlu0 %748  ;;  %789 = vmatprep.subr.mxu0 %v781_v15  ;;  %662 = vmatprep.mubr.f32.mxu0 %v6460_v2 }
  0x91   :  { %v756_v26 = vsel %vm752_vm4, %v751_v23, %v745_v8  ;;  %v753_v27 = vsel %vm752_vm4, %v749_v25, %v751_v23  ;;  %v754_v28 = vsel %vm752_vm4, %v747_v7, %v749_v25  ;;  %733 = vmatprep.mubr.f32.mxu1 %v6460_v2 }
  0x92   :  { %v783_v29 = vmul.f32 %v6722_v16, %v753_v27  ;;  %v780_v30 = vmul.f32 %v6725_v17, %v756_v26  ;;  %v782_v31 = vmul.f32 %v6728_v22, %v754_v28  ;;  %v6226_v26 = vld [vmem:[%s7582_s5 + $0x7] ss:$8 sm:$0xf] }
  0x93   :  { %v6219_v27 = vld [vmem:[%s7583_s1 + $0x28] sm:$0xff]  ;;  %v6827_v32 = vrot.slane %v6226_v26, %v6600_v12 }
  0x94   :  { %v938_v34 = vpop.permute.xlu1 %937  ;;  %860 = vmatprep.subr.mxu1 %v783_v29  ;;  %v936_v35 = vpop.permute.xlu0 %935 }
  0x95   :  { %v946_v43 = vsel %vm943_vm5, %v936_v35, %v938_v34 }
  0x96   :  { %6212 = vmatmul.mubr.msk.f32.vlgmr.msra.gmra.mrb[0].mxu0 %vm71_vm2, %v6211_v33  ;;  %6213 = vmatmul.mubr.msk.f32.vlgmr.msra.gmra.mrb[0].mxu1 %vm71_vm2, %v6211_v33  ;;  %v971_v52 = vmul.f32 %v6757_v41, %v946_v43  ;;  %v6830_v33 = vrot.slane %v6226_v26, %v6602_v13 }
  0x97   :  { %790 = vmatpush1.msra.mxu0 %v780_v30  ;;  %861 = vmatpush1.msra.mxu1 %v782_v31  ;;  %v6821_v30 = vrot.slane %v6226_v26, %v6596_v10  ;;  %v6824_v31 = vrot.slane %v6226_v26, %v6598_v11 }
  0x98   :  { %v942_v44 = vpop.permute.xlu1 %941  ;;  %v940_v45 = vpop.permute.xlu0 %939  ;;  %853 = vmatprep.mubr.f32.mxu0 %v6460_v2  ;;  %924 = vmatprep.mubr.f32.mxu1 %v6460_v2 }
  0x99   :  { %v947_v46 = vsel %vm943_vm5, %v942_v44, %v936_v35  ;;  %v944_v47 = vsel %vm943_vm5, %v940_v45, %v942_v44  ;;  %v945_v49 = vsel %vm943_vm5, %v938_v34, %v940_v45 }
  0x9a   :  { %v974_v50 = vmul.f32 %v6751_v36, %v947_v46  ;;  %v972_v51 = vmul.f32 %v6754_v37, %v945_v49  ;;  %v973_v53 = vmul.f32 %v6760_v42, %v944_v47 }
  0x9c   :  { %v1129_v59 = vpop.permute.xlu1 %1128  ;;  %1051 = vmatprep.subr.mxu1 %v974_v50  ;;  %980 = vmatprep.subr.mxu0 %v972_v51  ;;  %v1127_v60 = vpop.permute.xlu0 %1126 }
  0x9d   :  { %v1137_v1 = vsel %vm1134_vm6, %v1127_v60, %v1129_v59 }
  0x9e   :  { %6216 = vmatmul.mubr.msk.f32.vlgmr.msra.gmra.mrb[0].mxu0 %vm71_vm2, %v6215_v55  ;;  %6217 = vmatmul.mubr.msk.f32.vlgmr.msra.gmra.mrb[0].mxu1 %vm71_vm2, %v6215_v55  ;;  %v1162_v23 = vmul.f32 %v6792_v63, %v1137_v1 }
  0x9f   :  { %981 = vmatpush1.msra.mxu0 %v971_v52  ;;  %1052 = vmatpush1.msra.mxu1 %v973_v53  ;;  %v6230_v52 = vld [vmem:[%s7582_s5 + $0x20] ss:$8 sm:$0xf] }
  0xa0   :  { %v1133_v4 = vpop.permute.xlu1 %1132  ;;  %v1131_v5 = vpop.permute.xlu0 %1130  ;;  %1044 = vmatprep.mubr.f32.mxu0 %v6460_v2  ;;  %1115 = vmatprep.mubr.f32.mxu1 %v6460_v2  ;;  %v6223_v53 = vld [vmem:[%s7583_s1 + $0x30] sm:$0xff]  ;;  %v6862_v1 = vrot.slane %v6230_v52, %v6600_v12 }
  0xa1   :  { %v1138_v6 = vsel %vm1134_vm6, %v1133_v4, %v1127_v60  ;;  %v1135_v7 = vsel %vm1134_vm6, %v1131_v5, %v1133_v4  ;;  %v1136_v8 = vsel %vm1134_vm6, %v1129_v59, %v1131_v5  ;;  %v6856_v59 = vrot.slane %v6230_v52, %v6596_v10 }
  0xa2   :  { %v1165_v14 = vmul.f32 %v6786_v61, %v1138_v6  ;;  %v1163_v15 = vmul.f32 %v6789_v62, %v1136_v8  ;;  %v1164_v25 = vmul.f32 %v6795_v0, %v1135_v7  ;;  %v6859_v60 = vrot.slane %v6230_v52, %v6598_v11 }
  0xa3   :  { %v6865_v4 = vrot.slane %v6230_v52, %v6602_v13 }
  0xa4   :  { %v1320_v28 = vpop.permute.xlu1 %1319  ;;  %1242 = vmatprep.subr.mxu1 %v1165_v14  ;;  %1171 = vmatprep.subr.mxu0 %v1163_v15  ;;  %v1318_v29 = vpop.permute.xlu0 %1317 }
  0xa5   :  { %v1328_v34 = vsel %vm1325_vm7, %v1318_v29, %v1320_v28 }
  0xa6   :  { %6220 = vmatmul.mubr.msk.f32.vlgmr.msra.gmra.mrb[0].mxu0 %vm71_vm2, %v6219_v27  ;;  %6221 = vmatmul.mubr.msk.f32.vlgmr.msra.gmra.mrb[0].mxu1 %vm71_vm2, %v6219_v27  ;;  %v1353_v50 = vmul.f32 %v6827_v32, %v1328_v34 }
  0xa7   :  { %1172 = vmatpush1.msra.mxu0 %v1162_v23  ;;  %1243 = vmatpush1.msra.mxu1 %v1164_v25  ;;  %v6227_v23 = vld [vmem:[%s7583_s1 + $0x38] sm:$0xff]  ;;  %v6231_v25 = vld [vmem:[%s7583_s1 + $0x40] sm:$0xff] }
  0xa8   :  { %v1324_v35 = vpop.permute.xlu1 %1323  ;;  %v1322_v43 = vpop.permute.xlu0 %1321  ;;  %1235 = vmatprep.mubr.f32.mxu0 %v6460_v2  ;;  %1306 = vmatprep.mubr.f32.mxu1 %v6460_v2 }
  0xa9   :  { %v1329_v44 = vsel %vm1325_vm7, %v1324_v35, %v1318_v29  ;;  %v1326_v45 = vsel %vm1325_vm7, %v1322_v43, %v1324_v35  ;;  %v1327_v46 = vsel %vm1325_vm7, %v1320_v28, %v1322_v43 }
  0xaa   :  { %v1356_v47 = vmul.f32 %v6821_v30, %v1329_v44  ;;  %v1354_v49 = vmul.f32 %v6824_v31, %v1327_v46  ;;  %v1355_v51 = vmul.f32 %v6830_v33, %v1326_v45 }
  0xac   :  { %v1511_v54 = vpop.permute.xlu1 %1510  ;;  %1433 = vmatprep.subr.mxu1 %v1356_v47  ;;  %1362 = vmatprep.subr.mxu0 %v1354_v49  ;;  %v1509_v55 = vpop.permute.xlu0 %1508 }
  0xad   :  { %v1519_v5 = vsel %vm1516_vm8, %v1509_v55, %v1511_v54 }
  0xae   :  { %6224 = vmatmul.mubr.msk.f32.vlgmr.msra.gmra.mrb[0].mxu0 %vm71_vm2, %v6223_v53  ;;  %6225 = vmatmul.mubr.msk.f32.vlgmr.msra.gmra.mrb[0].mxu1 %vm71_vm2, %v6223_v53  ;;  %v1544_v14 = vmul.f32 %v6862_v1, %v1519_v5 }
  0xaf   :  { %1363 = vmatpush1.msra.mxu0 %v1353_v50  ;;  %1434 = vmatpush1.msra.mxu1 %v1355_v51  ;;  %v3191_v51 = vld [vmem:[%s7584_s4] sm:$0xff] }
  0xb0   :  { %v1515_v6 = vpop.permute.xlu1 %1514  ;;  %v1513_v7 = vpop.permute.xlu0 %1512  ;;  %1426 = vmatprep.mubr.f32.mxu0 %v6460_v2  ;;  %1497 = vmatprep.mubr.f32.mxu1 %v6460_v2 }
  0xb1   :  { %v1520_v10 = vsel %vm1516_vm8, %v1515_v6, %v1509_v55  ;;  %v1517_v11 = vsel %vm1516_vm8, %v1513_v7, %v1515_v6  ;;  %v1518_v12 = vsel %vm1516_vm8, %v1511_v54, %v1513_v7 }
  0xb2   :  { %v1547_v13 = vmul.f32 %v6856_v59, %v1520_v10  ;;  %v1545_v8 = vmul.f32 %v6859_v60, %v1518_v12  ;;  %v1546_v15 = vmul.f32 %v6865_v4, %v1517_v11 }
  0xb4   :  { %1624 = vmatprep.subr.mxu1 %v1547_v13  ;;  %1553 = vmatprep.subr.mxu0 %v1545_v8 }
  0xb6   :  { %6228 = vmatmul.mubr.msk.f32.vlgmr.msra.gmra.mrb[0].mxu0 %vm71_vm2, %v6227_v23  ;;  %6229 = vmatmul.mubr.msk.f32.vlgmr.msra.gmra.mrb[0].mxu1 %vm71_vm2, %v6227_v23 }
  0xb7   :  { %1554 = vmatpush1.msra.mxu0 %v1544_v14  ;;  %1625 = vmatpush1.msra.mxu1 %v1546_v15  ;;  %v1731_v15 = vld [vmem:[%s7585_s3] sm:$0xff] }
  0xb8   :  { %1617 = vmatprep.mubr.f32.mxu0 %v6460_v2  ;;  %1688 = vmatprep.mubr.f32.mxu1 %v6460_v2 }
  0xbe   :  { %6232 = vmatmul.mubr.msk.f32.vlgmr.msra.gmra.mrb[0].mxu0 %vm71_vm2, %v6231_v25  ;;  %6233 = vmatmul.mubr.msk.f32.vlgmr.msra.gmra.mrb[0].mxu1 %vm71_vm2, %v6231_v25 }
  0xbf   :  { %1799 = vmatprep.mubr.f32.mxu0 %v6460_v2  ;;  %1870 = vmatprep.mubr.f32.mxu1 %v6460_v2 }
  0xc1   :  { %v1703_v26 = vpop.permute.xlu0 %1702 }
 0x191   :  { %v1619_v27 = vpop.f32.mrb[0].mxu0  ;;  %v1690_v28 = vpop.f32.mrb[0].mxu1 }
 0x192   :  { %v1705_v29 = vadd.f32 %v1703_v26, %v1619_v27  ;;  %v1707_v34 = vadd.f32 %v1703_v26, %v1690_v28  ;;  %v1621_v35 = vpop.f32.mrb[1].mxu0  ;;  %v1692_v43 = vpop.f32.mrb[1].mxu1 }
 0x193   :  { %v1706_v46 = vadd.f32 %v1703_v26, %v1621_v35  ;;  %v1708_v49 = vadd.f32 %v1703_v26, %v1692_v43 }
 0x194   :  { %v6895_v44 = vmax.f32 %v1705_v29, 0.0  ;;  %v6897_v45 = vmax.f32 %v1707_v34, 0.0 }
 0x195   :  { %v1710_v47 = vmax.f32 %v1706_v46, 0.0  ;;  %v1712_v50 = vmax.f32 %v1708_v49, 0.0 }
 0x196   :  { %1719 = vrot.lane.b32.xlu0 %v6897_v45, %s6461_s25  ;;  %1715 = vrot.lane.b32.xlu1 %v6895_v44, %s6461_s25 }
 0x19a   :  { %2022 = vrot.lane.b32.xlu0 %v6895_v44, %s6462_s30  ;;  %1717 = vrot.lane.b32.xlu1 %v1710_v47, %s6461_s25 }
 0x19e   :  { %2026 = vrot.lane.b32.xlu0 %v6897_v45, %s6462_s30  ;;  %1721 = vrot.lane.b32.xlu1 %v1712_v50, %s6461_s25 }
 0x1a2   :  { %2189 = vrot.lane.b32.xlu0 %v6895_v44, %s6463_s7  ;;  %2024 = vrot.lane.b32.xlu1 %v1710_v47, %s6462_s30 }
 0x1a6   :  { %2193 = vrot.lane.b32.xlu0 %v6897_v45, %s6463_s7  ;;  %2028 = vrot.lane.b32.xlu1 %v1712_v50, %s6462_s30 }
 0x1aa   :  { %2356 = vrot.lane.b32.xlu0 %v6895_v44, %s6464_s8  ;;  %2191 = vrot.lane.b32.xlu1 %v1710_v47, %s6463_s7 }
 0x1ae   :  { %2360 = vrot.lane.b32.xlu0 %v6897_v45, %s6464_s8  ;;  %2195 = vrot.lane.b32.xlu1 %v1712_v50, %s6463_s7 }
 0x1b2   :  { %2523 = vrot.lane.b32.xlu0 %v6895_v44, %s6465_s9  ;;  %2358 = vrot.lane.b32.xlu1 %v1710_v47, %s6464_s8 }
 0x1b6   :  { %2527 = vrot.lane.b32.xlu0 %v6897_v45, %s6465_s9  ;;  %2362 = vrot.lane.b32.xlu1 %v1712_v50, %s6464_s8 }
 0x1ba   :  { %2690 = vrot.lane.b32.xlu0 %v6895_v44, %s6466_s10  ;;  %2525 = vrot.lane.b32.xlu1 %v1710_v47, %s6465_s9 }
 0x1be   :  { %2694 = vrot.lane.b32.xlu0 %v6897_v45, %s6466_s10  ;;  %2529 = vrot.lane.b32.xlu1 %v1712_v50, %s6465_s9 }
 0x1c2   :  { %2857 = vrot.lane.b32.xlu0 %v6895_v44, %s6467_s11  ;;  %2692 = vrot.lane.b32.xlu1 %v1710_v47, %s6466_s10 }
 0x1c6   :  { %2861 = vrot.lane.b32.xlu0 %v6897_v45, %s6467_s11  ;;  %2696 = vrot.lane.b32.xlu1 %v1712_v50, %s6466_s10 }
 0x1ca   :  { %3024 = vrot.lane.b32.xlu0 %v6895_v44, %s6468_s12  ;;  %2859 = vrot.lane.b32.xlu1 %v1710_v47, %s6467_s11 }
 0x1ce   :  { %3028 = vrot.lane.b32.xlu0 %v6897_v45, %s6468_s12  ;;  %2863 = vrot.lane.b32.xlu1 %v1712_v50, %s6467_s11 }
 0x1d2   :  { %3194 = vperm.xlu0 %6454, %v3191_v51   ;;  %3026 = vrot.lane.b32.xlu1 %v1710_v47, %s6468_s12 }
 0x1d6   :  { %3030 = vrot.lane.b32.xlu1 %v1712_v50, %s6468_s12 }
 0x208   :  { %v1720_v52 = vpop.permute.xlu0 %1719  ;;  %v1716_v53 = vpop.permute.xlu1 %1715 }
 0x20c   :  { %v2023_v54 = vpop.permute.xlu0 %2022  ;;  %v1718_v55 = vpop.permute.xlu1 %1717 }
 0x20d   :  { %v1725_v5 = vsel %vm39_vm0, %v1716_v53, %v1718_v55  ;;  %v1724_v7 = vsel %vm39_vm0, %v1718_v55, %v1720_v52 }
 0x20e   :  { %v1728_v6 = vmul.f32 %v1725_v5, %v6615_v19  ;;  %v1729_v23 = vmul.f32 %v1724_v7, %v6621_v21 }
 0x210   :  { %v2027_v10 = vpop.permute.xlu0 %2026  ;;  %1735 = vmatprep.subr.mxu0 %v1728_v6  ;;  %v1722_v11 = vpop.permute.xlu1 %1721 }
 0x211   :  { %v1723_v12 = vsel %vm39_vm0, %v1720_v52, %v1722_v11  ;;  %v1726_v13 = vsel %vm39_vm0, %v1722_v11, %v1716_v53 }
 0x212   :  { %v1727_v8 = vmul.f32 %v1726_v13, %v6618_v20  ;;  %v1730_v14 = vmul.f32 %v1723_v12, %v6612_v18  ;;  %v6239_v12 = vld [vmem:[%s7585_s3 + $0x8] sm:$0xff] }
 0x214   :  { %v2190_v25 = vpop.permute.xlu0 %2189  ;;  %1736 = vmatpush1.msra.mxu0 %v1727_v8  ;;  %1806 = vmatprep.subr.mxu1 %v1730_v14  ;;  %v2025_v26 = vpop.permute.xlu1 %2024 }
 0x215   :  { %v2032_v27 = vsel %vm370_vm1, %v2023_v54, %v2025_v26  ;;  %6235 = vmatmul.mubr.msk.f32.vlgmr.msra.gmra.mrb[2].mxu0 %vm71_vm2, %v1731_v15  ;;  %1807 = vmatpush1.msra.mxu1 %v1729_v23  ;;  %v2031_v46 = vsel %vm370_vm1, %v2025_v26, %v2027_v10 }
 0x216   :  { %v2035_v28 = vmul.f32 %v2032_v27, %v6625_v24  ;;  %1880 = vmatprep.subr.mxu0 %v1710_v47  ;;  %6236 = vmatmul.mubr.msk.f32.vlgmr.msra.gmra.mrb[2].mxu1 %vm71_vm2, %v1731_v15  ;;  %v6234_v47 = vld [vmem:[%s7585_s3 + $0x20] sm:$0xff]  ;;  %v2036_v51 = vmul.f32 %v2031_v46, %v6655_v40 }
 0x217   :  { %1881 = vmatpush1.msra.mxu0 %v6895_v44  ;;  %1951 = vmatprep.subr.mxu1 %v1712_v50 }
 0x218   :  { %1952 = vmatpush1.msra.mxu1 %v6897_v45  ;;  %v2194_v29 = vpop.permute.xlu0 %2193  ;;  %2043 = vmatprep.subr.mxu0 %v2035_v28  ;;  %v2029_v34 = vpop.permute.xlu1 %2028 }
 0x219   :  { %v2030_v35 = vsel %vm370_vm1, %v2027_v10, %v2029_v34  ;;  %v2033_v43 = vsel %vm370_vm1, %v2029_v34, %v2023_v54  ;;  %1944 = vmatprep.mubr.f32.mxu0 %v6460_v2  ;;  %2015 = vmatprep.mubr.f32.mxu1 %v6460_v2 }
 0x21a   :  { %v2034_v44 = vmul.f32 %v2033_v43, %v6651_v39  ;;  %v2037_v45 = vmul.f32 %v2030_v35, %v6648_v38  ;;  %v6242_v43 = vld [vmem:[%s7585_s3 + $0x10] sm:$0xff] }
 0x21c   :  { %v2357_v49 = vpop.permute.xlu0 %2356  ;;  %2114 = vmatprep.subr.mxu1 %v2037_v45  ;;  %v2192_v50 = vpop.permute.xlu1 %2191 }
 0x21d   :  { %v2199_v52 = vsel %vm561_vm3, %v2190_v25, %v2192_v50  ;;  %6237 = vmatmul.mubr.msk.f32.vlgmr.msra.gmra.mrb[2].mxu0 %vm71_vm2, %v6234_v47  ;;  %v2198_v7 = vsel %vm561_vm3, %v2192_v50, %v2194_v29 }
 0x21e   :  { %v2202_v53 = vmul.f32 %v2199_v52, %v6674_v48  ;;  %2044 = vmatpush1.msra.mxu0 %v2034_v44  ;;  %6238 = vmatmul.mubr.msk.f32.vlgmr.msra.gmra.mrb[2].mxu1 %vm71_vm2, %v6234_v47  ;;  %v2203_v14 = vmul.f32 %v2198_v7, %v6693_v58 }
 0x21f   :  { %2115 = vmatpush1.msra.mxu1 %v2036_v51  ;;  %2107 = vmatprep.mubr.f32.mxu0 %v6460_v2 }
 0x220   :  { %v2361_v54 = vpop.permute.xlu0 %2360  ;;  %2210 = vmatprep.subr.mxu0 %v2202_v53  ;;  %v2196_v55 = vpop.permute.xlu1 %2195  ;;  %2178 = vmatprep.mubr.f32.mxu1 %v6460_v2 }
 0x221   :  { %v2197_v5 = vsel %vm561_vm3, %v2194_v29, %v2196_v55  ;;  %v2200_v6 = vsel %vm561_vm3, %v2196_v55, %v2190_v25 }
 0x222   :  { %v2201_v10 = vmul.f32 %v2200_v6, %v6690_v57  ;;  %v2204_v11 = vmul.f32 %v2197_v5, %v6687_v56  ;;  %v6245_v5 = vld [vmem:[%s7585_s3 + $0x18] sm:$0xff] }
 0x224   :  { %v2524_v13 = vpop.permute.xlu0 %2523  ;;  %2281 = vmatprep.subr.mxu1 %v2204_v11  ;;  %v2359_v8 = vpop.permute.xlu1 %2358 }
 0x225   :  { %v2366_v15 = vsel %vm752_vm4, %v2357_v49, %v2359_v8  ;;  %6240 = vmatmul.mubr.msk.f32.vlgmr.msra.gmra.mrb[2].mxu0 %vm71_vm2, %v6239_v12  ;;  %v2365_v29 = vsel %vm752_vm4, %v2359_v8, %v2361_v54 }
 0x226   :  { %v2369_v23 = vmul.f32 %v2366_v15, %v6709_v3  ;;  %2211 = vmatpush1.msra.mxu0 %v2201_v10  ;;  %6241 = vmatmul.mubr.msk.f32.vlgmr.msra.gmra.mrb[2].mxu1 %vm71_vm2, %v6239_v12  ;;  %v2370_v45 = vmul.f32 %v2365_v29, %v6728_v22 }
 0x227   :  { %2282 = vmatpush1.msra.mxu1 %v2203_v14  ;;  %2274 = vmatprep.mubr.f32.mxu0 %v6460_v2 }
 0x228   :  { %v2528_v25 = vpop.permute.xlu0 %2527  ;;  %2377 = vmatprep.subr.mxu0 %v2369_v23  ;;  %v2363_v26 = vpop.permute.xlu1 %2362  ;;  %2345 = vmatprep.mubr.f32.mxu1 %v6460_v2 }
 0x229   :  { %v2364_v27 = vsel %vm752_vm4, %v2361_v54, %v2363_v26  ;;  %v2367_v28 = vsel %vm752_vm4, %v2363_v26, %v2357_v49 }
 0x22a   :  { %v2368_v34 = vmul.f32 %v2367_v28, %v6725_v17  ;;  %v2371_v35 = vmul.f32 %v2364_v27, %v6722_v16  ;;  %v6248_v27 = vld [vmem:[%s7585_s3 + $0x28] sm:$0xff] }
 0x22c   :  { %v2691_v46 = vpop.permute.xlu0 %2690  ;;  %2448 = vmatprep.subr.mxu1 %v2371_v35  ;;  %v2526_v44 = vpop.permute.xlu1 %2525 }
 0x22d   :  { %v2532_v47 = vsel %vm943_vm5, %v2526_v44, %v2528_v25  ;;  %6243 = vmatmul.mubr.msk.f32.vlgmr.msra.gmra.mrb[2].mxu0 %vm71_vm2, %v6242_v43  ;;  %v2533_v52 = vsel %vm943_vm5, %v2524_v13, %v2526_v44 }
 0x22e   :  { %v2536_v49 = vmul.f32 %v2532_v47, %v6754_v37  ;;  %2378 = vmatpush1.msra.mxu0 %v2368_v34  ;;  %6244 = vmatmul.mubr.msk.f32.vlgmr.msra.gmra.mrb[2].mxu1 %vm71_vm2, %v6242_v43  ;;  %v2535_v6 = vmul.f32 %v2533_v52, %v6757_v41 }
 0x22f   :  { %2449 = vmatpush1.msra.mxu1 %v2370_v45  ;;  %2441 = vmatprep.mubr.f32.mxu0 %v6460_v2 }
 0x230   :  { %v2695_v50 = vpop.permute.xlu0 %2694  ;;  %2544 = vmatprep.subr.mxu0 %v2536_v49  ;;  %v2530_v51 = vpop.permute.xlu1 %2529  ;;  %2512 = vmatprep.mubr.f32.mxu1 %v6460_v2 }
 0x231   :  { %v2534_v53 = vsel %vm943_vm5, %v2530_v51, %v2524_v13  ;;  %v2531_v54 = vsel %vm943_vm5, %v2528_v25, %v2530_v51  ;;  %v6251_v51 = vld [vmem:[%s7585_s3 + $0x30] sm:$0xff] }
 0x232   :  { %v2538_v55 = vmul.f32 %v2534_v53, %v6751_v36  ;;  %v2537_v11 = vmul.f32 %v2531_v54, %v6760_v42 }
 0x234   :  { %v2858_v7 = vpop.permute.xlu0 %2857  ;;  %2615 = vmatprep.subr.mxu1 %v2538_v55  ;;  %v2693_v10 = vpop.permute.xlu1 %2692 }
 0x235   :  { %v2699_v12 = vsel %vm1134_vm6, %v2693_v10, %v2695_v50  ;;  %6246 = vmatmul.mubr.msk.f32.vlgmr.msra.gmra.mrb[2].mxu0 %vm71_vm2, %v6245_v5  ;;  %v2700_v15 = vsel %vm1134_vm6, %v2691_v46, %v2693_v10 }
 0x236   :  { %v2703_v13 = vmul.f32 %v2699_v12, %v6789_v62  ;;  %2545 = vmatpush1.msra.mxu0 %v2535_v6  ;;  %6247 = vmatmul.mubr.msk.f32.vlgmr.msra.gmra.mrb[2].mxu1 %vm71_vm2, %v6245_v5  ;;  %v2702_v28 = vmul.f32 %v2700_v15, %v6792_v63 }
 0x237   :  { %2616 = vmatpush1.msra.mxu1 %v2537_v11  ;;  %2608 = vmatprep.mubr.f32.mxu0 %v6460_v2 }
 0x238   :  { %v2862_v8 = vpop.permute.xlu0 %2861  ;;  %2711 = vmatprep.subr.mxu0 %v2703_v13  ;;  %v2697_v14 = vpop.permute.xlu1 %2696  ;;  %2679 = vmatprep.mubr.f32.mxu1 %v6460_v2 }
 0x239   :  { %v2701_v23 = vsel %vm1134_vm6, %v2697_v14, %v2691_v46  ;;  %v2698_v25 = vsel %vm1134_vm6, %v2695_v50, %v2697_v14 }
 0x23a   :  { %v2705_v26 = vmul.f32 %v2701_v23, %v6786_v61  ;;  %v2704_v34 = vmul.f32 %v2698_v25, %v6795_v0  ;;  %v6257_v23 = vld [vmem:[%s7585_s3 + $0x40] sm:$0xff] }
 0x23c   :  { %2782 = vmatprep.subr.mxu1 %v2705_v26  ;;  %v2860_v29 = vpop.permute.xlu1 %2859  ;;  %v3025_v43 = vpop.permute.xlu0 %3024 }
 0x23d   :  { %v2866_v35 = vsel %vm1325_vm7, %v2860_v29, %v2862_v8  ;;  %6249 = vmatmul.mubr.msk.f32.vlgmr.msra.gmra.mrb[2].mxu0 %vm71_vm2, %v6248_v27  ;;  %v2867_v45 = vsel %vm1325_vm7, %v2858_v7, %v2860_v29 }
 0x23e   :  { %v2870_v46 = vmul.f32 %v2866_v35, %v6824_v31  ;;  %2712 = vmatpush1.msra.mxu0 %v2702_v28  ;;  %6250 = vmatmul.mubr.msk.f32.vlgmr.msra.gmra.mrb[2].mxu1 %vm71_vm2, %v6248_v27  ;;  %v2869_v52 = vmul.f32 %v2867_v45, %v6827_v32  ;;  %v6457_v45 = vld [vmem:[%s7580_s0 + $0x8] sm:$0xff] }
 0x23f   :  { %2783 = vmatpush1.msra.mxu1 %v2704_v34  ;;  %2775 = vmatprep.mubr.f32.mxu0 %v6460_v2 }
 0x240   :  { %2878 = vmatprep.subr.mxu0 %v2870_v46  ;;  %v2864_v44 = vpop.permute.xlu1 %2863  ;;  %2846 = vmatprep.mubr.f32.mxu1 %v6460_v2  ;;  %v3029_v53 = vpop.permute.xlu0 %3028 }
 0x241   :  { %v2868_v47 = vsel %vm1325_vm7, %v2864_v44, %v2858_v7  ;;  %v2865_v49 = vsel %vm1325_vm7, %v2862_v8, %v2864_v44  ;;  %v6254_v8 = vld [vmem:[%s7585_s3 + $0x38] sm:$0xff] }
 0x242   :  { %v2872_v50 = vmul.f32 %v2868_v47, %v6821_v30  ;;  %v2871_v55 = vmul.f32 %v2865_v49, %v6830_v33 }
 0x244   :  { %2949 = vmatprep.subr.mxu1 %v2872_v50  ;;  %v3027_v54 = vpop.permute.xlu1 %3026  ;;  %v6458_v50 = vld [vmem:[%s7580_s0 + $0x10] sm:$0xff] }
 0x245   :  { %v3033_v5 = vsel %vm1516_vm8, %v3027_v54, %v3029_v53  ;;  %6252 = vmatmul.mubr.msk.f32.vlgmr.msra.gmra.mrb[2].mxu0 %vm71_vm2, %v6251_v51  ;;  %v3034_v10 = vsel %vm1516_vm8, %v3025_v43, %v3027_v54  ;;  %v6287_v54 = vld [vmem:[%s7581_s2 + $0x8] sm:$0xff] }
 0x246   :  { %v3037_v6 = vmul.f32 %v3033_v5, %v6859_v60  ;;  %2879 = vmatpush1.msra.mxu0 %v2869_v52  ;;  %6253 = vmatmul.mubr.msk.f32.vlgmr.msra.gmra.mrb[2].mxu1 %vm71_vm2, %v6251_v51  ;;  %v3036_v14 = vmul.f32 %v3034_v10, %v6862_v1  ;;  %v6459_v52 = vld [vmem:[%s7580_s0 + $0x18] sm:$0xff] }
 0x247   :  { %2950 = vmatpush1.msra.mxu1 %v2871_v55  ;;  %2942 = vmatprep.mubr.f32.mxu0 %v6460_v2 }
 0x248   :  { %3045 = vmatprep.subr.mxu0 %v3037_v6  ;;  %v3031_v7 = vpop.permute.xlu1 %3030  ;;  %3013 = vmatprep.mubr.f32.mxu1 %v6460_v2 }
 0x249   :  { %v3035_v11 = vsel %vm1516_vm8, %v3031_v7, %v3025_v43  ;;  %v3032_v12 = vsel %vm1516_vm8, %v3029_v53, %v3031_v7  ;;  %v6456_v43 = vld [vmem:[%s7580_s0] sm:$0xff] }
 0x24a   :  { %v3039_v13 = vmul.f32 %v3035_v11, %v6856_v59  ;;  %v3038_v15 = vmul.f32 %v3032_v12, %v6865_v4 }
 0x24c   :  { %3116 = vmatprep.subr.mxu1 %v3039_v13 }
 0x24d   :  { %6255 = vmatmul.mubr.msk.f32.vlgmr.msra.gmra.mrb[2].mxu0 %vm71_vm2, %v6254_v8 }
 0x24e   :  { %3046 = vmatpush1.msra.mxu0 %v3036_v14  ;;  %6256 = vmatmul.mubr.msk.f32.vlgmr.msra.gmra.mrb[2].mxu1 %vm71_vm2, %v6254_v8 }
 0x24f   :  { %3117 = vmatpush1.msra.mxu1 %v3038_v15  ;;  %3109 = vmatprep.mubr.f32.mxu0 %v6460_v2 }
 0x250   :  { %3180 = vmatprep.mubr.f32.mxu1 %v6460_v2 }
 0x251   :  { %v3195_v25 = vpop.permute.xlu0 %3194 }
 0x255   :  { %6258 = vmatmul.mubr.msk.f32.vlgmr.msra.gmra.mrb[2].mxu0 %vm71_vm2, %v6257_v23 }
 0x256   :  { %6259 = vmatmul.mubr.msk.f32.vlgmr.msra.gmra.mrb[2].mxu1 %vm71_vm2, %v6257_v23  ;;  %3292 = vmatprep.mubr.f32.mxu0 %v6460_v2  ;;  %v6261_v23 = vld [vmem:[%s7583_s1 + $0x48] sm:$0xff] }
 0x257   :  { %3363 = vmatprep.mubr.f32.mxu1 %v6460_v2 }
 0x328   :  { %v3111_v26 = vpop.f32.mrb[2].mxu0 }
 0x329   :  { %v3197_v27 = vadd.f32 %v3195_v25, %v3111_v26  ;;  %v3113_v28 = vpop.f32.mrb[3].mxu0  ;;  %v3182_v29 = vpop.f32.mrb[2].mxu1 }
 0x32a   :  { %v3198_v34 = vadd.f32 %v3195_v25, %v3113_v28  ;;  %v3184_v35 = vpop.f32.mrb[3].mxu1  ;;  %v3199_v44 = vadd.f32 %v3195_v25, %v3182_v29 }
 0x32b   :  { %v7114_v46 = vadd.f32 %v6456_v43, %v3197_v27  ;;  %v3200_v49 = vadd.f32 %v3195_v25, %v3184_v35 }
 0x32c   :  { %v7119_v47 = vadd.f32 %v6457_v45, %v3198_v34  ;;  %v7128_v51 = vadd.f32 %v6458_v50, %v3199_v44 }
 0x32d   :  { %3207 = vrot.lane.b32.xlu1 %v7114_v46, %s6461_s25  ;;  %v7133_v53 = vadd.f32 %v6459_v52, %v3200_v49  ;;  %v6260_v52 = vld [vmem:[%s7583_s1 + $0x68] sm:$0xff] }
 0x32e   :  { %3209 = vrot.lane.b32.xlu0 %v7119_v47, %s6461_s25 }
 0x331   :  { %3211 = vrot.lane.b32.xlu1 %v7128_v51, %s6461_s25 }
 0x332   :  { %3213 = vrot.lane.b32.xlu0 %v7133_v53, %s6461_s25 }
 0x335   :  { %3515 = vrot.lane.b32.xlu1 %v7114_v46, %s6462_s30 }
 0x336   :  { %3517 = vrot.lane.b32.xlu0 %v7119_v47, %s6462_s30 }
 0x339   :  { %3519 = vrot.lane.b32.xlu1 %v7128_v51, %s6462_s30 }
 0x33a   :  { %3521 = vrot.lane.b32.xlu0 %v7133_v53, %s6462_s30 }
 0x33d   :  { %3682 = vrot.lane.b32.xlu1 %v7114_v46, %s6463_s7 }
 0x33e   :  { %3684 = vrot.lane.b32.xlu0 %v7119_v47, %s6463_s7 }
 0x341   :  { %3686 = vrot.lane.b32.xlu1 %v7128_v51, %s6463_s7 }
 0x342   :  { %3688 = vrot.lane.b32.xlu0 %v7133_v53, %s6463_s7 }
 0x345   :  { %3849 = vrot.lane.b32.xlu1 %v7114_v46, %s6464_s8 }
 0x346   :  { %3851 = vrot.lane.b32.xlu0 %v7119_v47, %s6464_s8 }
 0x349   :  { %3853 = vrot.lane.b32.xlu1 %v7128_v51, %s6464_s8 }
 0x34a   :  { %3855 = vrot.lane.b32.xlu0 %v7133_v53, %s6464_s8 }
 0x34d   :  { %4016 = vrot.lane.b32.xlu1 %v7114_v46, %s6465_s9 }
 0x34e   :  { %4018 = vrot.lane.b32.xlu0 %v7119_v47, %s6465_s9 }
 0x351   :  { %4020 = vrot.lane.b32.xlu1 %v7128_v51, %s6465_s9 }
 0x352   :  { %4022 = vrot.lane.b32.xlu0 %v7133_v53, %s6465_s9 }
 0x355   :  { %4183 = vrot.lane.b32.xlu1 %v7114_v46, %s6466_s10 }
 0x356   :  { %4185 = vrot.lane.b32.xlu0 %v7119_v47, %s6466_s10 }
 0x359   :  { %4187 = vrot.lane.b32.xlu1 %v7128_v51, %s6466_s10 }
 0x35a   :  { %4189 = vrot.lane.b32.xlu0 %v7133_v53, %s6466_s10 }
 0x35d   :  { %4350 = vrot.lane.b32.xlu1 %v7114_v46, %s6467_s11 }
 0x35e   :  { %4352 = vrot.lane.b32.xlu0 %v7119_v47, %s6467_s11 }
 0x361   :  { %4354 = vrot.lane.b32.xlu1 %v7128_v51, %s6467_s11 }
 0x362   :  { %4356 = vrot.lane.b32.xlu0 %v7133_v53, %s6467_s11 }
 0x365   :  { %4517 = vrot.lane.b32.xlu1 %v7114_v46, %s6468_s12 }
 0x366   :  { %4519 = vrot.lane.b32.xlu0 %v7119_v47, %s6468_s12 }
 0x369   :  { %4521 = vrot.lane.b32.xlu1 %v7128_v51, %s6468_s12 }
 0x36a   :  { %4523 = vrot.lane.b32.xlu0 %v7133_v53, %s6468_s12 }
 0x36d   :  { %4688 = vperm.xlu1 %6455, %v6287_v54  }
 0x39f   :  { %v3208_v55 = vpop.permute.xlu1 %3207 }
 0x3a0   :  { %v3210_v5 = vpop.permute.xlu0 %3209 }
 0x3a1   :  { %v3217_v6 = vsel %vm39_vm0, %v3208_v55, %v3210_v5 }
 0x3a2   :  { %v3220_v7 = vmul.f32 %v3217_v6, %v6615_v19 }
 0x3a3   :  { %v3212_v10 = vpop.permute.xlu1 %3211 }
 0x3a4   :  { %v3216_v11 = vsel %vm39_vm0, %v3210_v5, %v3212_v10  ;;  %v3214_v12 = vpop.permute.xlu0 %3213  ;;  %3228 = vmatprep.subr.mxu0 %v3220_v7 }
 0x3a5   :  { %v3215_v13 = vsel %vm39_vm0, %v3212_v10, %v3214_v12  ;;  %v3218_v8 = vsel %vm39_vm0, %v3214_v12, %v3208_v55  ;;  %v3221_v25 = vmul.f32 %v3216_v11, %v6621_v21 }
 0x3a6   :  { %v3219_v14 = vmul.f32 %v3218_v8, %v6618_v20  ;;  %v3222_v15 = vmul.f32 %v3215_v13, %v6612_v18 }
 0x3a7   :  { %v3516_v26 = vpop.permute.xlu1 %3515 }
 0x3a8   :  { %v3518_v27 = vpop.permute.xlu0 %3517  ;;  %3229 = vmatpush1.msra.mxu0 %v3219_v14  ;;  %3299 = vmatprep.subr.mxu1 %v3222_v15 }
 0x3a9   :  { %v3525_v28 = vsel %vm370_vm1, %v3516_v26, %v3518_v27  ;;  %6262 = vmatmul.mubr.msk.f32.vlgmr.msra.gmra.mrb[4].mxu0 %vm71_vm2, %v6261_v23  ;;  %3300 = vmatpush1.msra.mxu1 %v3221_v25 }
 0x3aa   :  { %v3528_v29 = vmul.f32 %v3525_v28, %v6625_v24  ;;  %3373 = vmatprep.subr.mxu0 %v7119_v47  ;;  %6263 = vmatmul.mubr.msk.f32.vlgmr.msra.gmra.mrb[4].mxu1 %vm71_vm2, %v6261_v23  ;;  %v6266_v23 = vld [vmem:[%s7583_s1 + $0x50] sm:$0xff] }
 0x3ab   :  { %3374 = vmatpush1.msra.mxu0 %v7114_v46  ;;  %3444 = vmatprep.subr.mxu1 %v7133_v53  ;;  %v3520_v34 = vpop.permute.xlu1 %3519 }
 0x3ac   :  { %3445 = vmatpush1.msra.mxu1 %v7128_v51  ;;  %v3522_v35 = vpop.permute.xlu0 %3521  ;;  %3536 = vmatprep.subr.mxu0 %v3528_v29  ;;  %v3524_v45 = vsel %vm370_vm1, %v3518_v27, %v3520_v34 }
 0x3ad   :  { %v3523_v43 = vsel %vm370_vm1, %v3520_v34, %v3522_v35  ;;  %v3526_v44 = vsel %vm370_vm1, %v3522_v35, %v3516_v26  ;;  %3437 = vmatprep.mubr.f32.mxu0 %v6460_v2  ;;  %3508 = vmatprep.mubr.f32.mxu1 %v6460_v2  ;;  %v3529_v5 = vmul.f32 %v3524_v45, %v6655_v40 }
 0x3ae   :  { %v3527_v49 = vmul.f32 %v3526_v44, %v6651_v39  ;;  %v3530_v50 = vmul.f32 %v3523_v43, %v6648_v38 }
 0x3af   :  { %v3683_v54 = vpop.permute.xlu1 %3682 }
 0x3b0   :  { %v3685_v55 = vpop.permute.xlu0 %3684  ;;  %3607 = vmatprep.subr.mxu1 %v3530_v50 }
 0x3b1   :  { %v3692_v6 = vsel %vm561_vm3, %v3683_v54, %v3685_v55  ;;  %6264 = vmatmul.mubr.msk.f32.vlgmr.msra.gmra.mrb[4].mxu0 %vm71_vm2, %v6260_v52 }
 0x3b2   :  { %v3695_v7 = vmul.f32 %v3692_v6, %v6674_v48  ;;  %3537 = vmatpush1.msra.mxu0 %v3527_v49  ;;  %6265 = vmatmul.mubr.msk.f32.vlgmr.msra.gmra.mrb[4].mxu1 %vm71_vm2, %v6260_v52  ;;  %v6269_v52 = vld [vmem:[%s7583_s1 + $0x58] sm:$0xff] }
 0x3b3   :  { %3608 = vmatpush1.msra.mxu1 %v3529_v5  ;;  %v3687_v10 = vpop.permute.xlu1 %3686  ;;  %3600 = vmatprep.mubr.f32.mxu0 %v6460_v2 }
 0x3b4   :  { %v3689_v11 = vpop.permute.xlu0 %3688  ;;  %3703 = vmatprep.subr.mxu0 %v3695_v7  ;;  %3671 = vmatprep.mubr.f32.mxu1 %v6460_v2  ;;  %v3691_v8 = vsel %vm561_vm3, %v3685_v55, %v3687_v10 }
 0x3b5   :  { %v3690_v12 = vsel %vm561_vm3, %v3687_v10, %v3689_v11  ;;  %v3693_v13 = vsel %vm561_vm3, %v3689_v11, %v3683_v54  ;;  %v3696_v27 = vmul.f32 %v3691_v8, %v6693_v58 }
 0x3b6   :  { %v3694_v14 = vmul.f32 %v3693_v13, %v6690_v57  ;;  %v3697_v15 = vmul.f32 %v3690_v12, %v6687_v56 }
 0x3b7   :  { %v3850_v25 = vpop.permute.xlu1 %3849 }
 0x3b8   :  { %v3852_v26 = vpop.permute.xlu0 %3851  ;;  %3774 = vmatprep.subr.mxu1 %v3697_v15  ;;  %v6272_v15 = vld [vmem:[%s7583_s1 + $0x60] sm:$0xff] }
 0x3b9   :  { %v3859_v28 = vsel %vm752_vm4, %v3850_v25, %v3852_v26  ;;  %6267 = vmatmul.mubr.msk.f32.vlgmr.msra.gmra.mrb[4].mxu0 %vm71_vm2, %v6266_v23 }
 0x3ba   :  { %v3862_v29 = vmul.f32 %v3859_v28, %v6709_v3  ;;  %3704 = vmatpush1.msra.mxu0 %v3694_v14  ;;  %6268 = vmatmul.mubr.msk.f32.vlgmr.msra.gmra.mrb[4].mxu1 %vm71_vm2, %v6266_v23 }
 0x3bb   :  { %3775 = vmatpush1.msra.mxu1 %v3696_v27  ;;  %v3854_v34 = vpop.permute.xlu1 %3853  ;;  %3767 = vmatprep.mubr.f32.mxu0 %v6460_v2 }
 0x3bc   :  { %v3856_v35 = vpop.permute.xlu0 %3855  ;;  %3870 = vmatprep.subr.mxu0 %v3862_v29  ;;  %3838 = vmatprep.mubr.f32.mxu1 %v6460_v2  ;;  %v3858_v45 = vsel %vm752_vm4, %v3852_v26, %v3854_v34 }
 0x3bd   :  { %v3857_v43 = vsel %vm752_vm4, %v3854_v34, %v3856_v35  ;;  %v3860_v44 = vsel %vm752_vm4, %v3856_v35, %v3850_v25  ;;  %v3863_v5 = vmul.f32 %v3858_v45, %v6728_v22 }
 0x3be   :  { %v3861_v49 = vmul.f32 %v3860_v44, %v6725_v17  ;;  %v3864_v50 = vmul.f32 %v3857_v43, %v6722_v16 }
 0x3bf   :  { %v4017_v54 = vpop.permute.xlu1 %4016 }
 0x3c0   :  { %v4019_v55 = vpop.permute.xlu0 %4018  ;;  %3941 = vmatprep.subr.mxu1 %v3864_v50  ;;  %v6275_v50 = vld [vmem:[%s7583_s1 + $0x70] sm:$0xff] }
 0x3c1   :  { %6270 = vmatmul.mubr.msk.f32.vlgmr.msra.gmra.mrb[4].mxu0 %vm71_vm2, %v6269_v52  ;;  %v4026_v11 = vsel %vm943_vm5, %v4017_v54, %v4019_v55 }
 0x3c2   :  { %3871 = vmatpush1.msra.mxu0 %v3861_v49  ;;  %6271 = vmatmul.mubr.msk.f32.vlgmr.msra.gmra.mrb[4].mxu1 %vm71_vm2, %v6269_v52  ;;  %v4028_v25 = vmul.f32 %v4026_v11, %v6757_v41 }
 0x3c3   :  { %3942 = vmatpush1.msra.mxu1 %v3863_v5  ;;  %v4021_v6 = vpop.permute.xlu1 %4020  ;;  %3934 = vmatprep.mubr.f32.mxu0 %v6460_v2 }
 0x3c4   :  { %v4025_v7 = vsel %vm943_vm5, %v4019_v55, %v4021_v6  ;;  %v4023_v10 = vpop.permute.xlu0 %4022  ;;  %4005 = vmatprep.mubr.f32.mxu1 %v6460_v2 }
 0x3c5   :  { %v4029_v12 = vmul.f32 %v4025_v7, %v6754_v37  ;;  %v4027_v13 = vsel %vm943_vm5, %v4023_v10, %v4017_v54  ;;  %v4024_v8 = vsel %vm943_vm5, %v4021_v6, %v4023_v10 }
 0x3c6   :  { %v4031_v14 = vmul.f32 %v4027_v13, %v6751_v36  ;;  %v4030_v27 = vmul.f32 %v4024_v8, %v6760_v42 }
 0x3c7   :  { %4037 = vmatprep.subr.mxu0 %v4029_v12  ;;  %v4184_v23 = vpop.permute.xlu1 %4183 }
 0x3c8   :  { %v4186_v26 = vpop.permute.xlu0 %4185  ;;  %4108 = vmatprep.subr.mxu1 %v4031_v14 }
 0x3c9   :  { %6273 = vmatmul.mubr.msk.f32.vlgmr.msra.gmra.mrb[4].mxu0 %vm71_vm2, %v6272_v15  ;;  %v4193_v35 = vsel %vm1134_vm6, %v4184_v23, %v4186_v26 }
 0x3ca   :  { %4038 = vmatpush1.msra.mxu0 %v4028_v25  ;;  %6274 = vmatmul.mubr.msk.f32.vlgmr.msra.gmra.mrb[4].mxu1 %vm71_vm2, %v6272_v15  ;;  %v4195_v54 = vmul.f32 %v4193_v35, %v6792_v63  ;;  %v6278_v15 = vld [vmem:[%s7583_s1 + $0x78] sm:$0xff] }
 0x3cb   :  { %4109 = vmatpush1.msra.mxu1 %v4030_v27  ;;  %v4188_v28 = vpop.permute.xlu1 %4187  ;;  %4101 = vmatprep.mubr.f32.mxu0 %v6460_v2 }
 0x3cc   :  { %v4192_v29 = vsel %vm1134_vm6, %v4186_v26, %v4188_v28  ;;  %v4190_v34 = vpop.permute.xlu0 %4189  ;;  %4172 = vmatprep.mubr.f32.mxu1 %v6460_v2 }
 0x3cd   :  { %v4196_v43 = vmul.f32 %v4192_v29, %v6789_v62  ;;  %v4194_v44 = vsel %vm1134_vm6, %v4190_v34, %v4184_v23  ;;  %v4191_v45 = vsel %vm1134_vm6, %v4188_v28, %v4190_v34 }
 0x3ce   :  { %v4198_v49 = vmul.f32 %v4194_v44, %v6786_v61  ;;  %v4197_v5 = vmul.f32 %v4191_v45, %v6795_v0 }
 0x3cf   :  { %4204 = vmatprep.subr.mxu0 %v4196_v43  ;;  %v4351_v52 = vpop.permute.xlu1 %4350 }
 0x3d0   :  { %v4353_v55 = vpop.permute.xlu0 %4352  ;;  %4275 = vmatprep.subr.mxu1 %v4198_v49 }
 0x3d1   :  { %6276 = vmatmul.mubr.msk.f32.vlgmr.msra.gmra.mrb[4].mxu0 %vm71_vm2, %v6275_v50  ;;  %v4360_v11 = vsel %vm1325_vm7, %v4351_v52, %v4353_v55 }
 0x3d2   :  { %4205 = vmatpush1.msra.mxu0 %v4195_v54  ;;  %6277 = vmatmul.mubr.msk.f32.vlgmr.msra.gmra.mrb[4].mxu1 %vm71_vm2, %v6275_v50  ;;  %v4362_v25 = vmul.f32 %v4360_v11, %v6827_v32  ;;  %v6281_v50 = vld [vmem:[%s7583_s1 + $0x80] sm:$0xff] }
 0x3d3   :  { %4276 = vmatpush1.msra.mxu1 %v4197_v5  ;;  %v4355_v6 = vpop.permute.xlu1 %4354  ;;  %4268 = vmatprep.mubr.f32.mxu0 %v6460_v2 }
 0x3d4   :  { %v4359_v7 = vsel %vm1325_vm7, %v4353_v55, %v4355_v6  ;;  %v4357_v10 = vpop.permute.xlu0 %4356  ;;  %4339 = vmatprep.mubr.f32.mxu1 %v6460_v2  ;;  %v6284_v55 = vld [vmem:[%s7583_s1 + $0x88] sm:$0xff] }
 0x3d5   :  { %v4363_v12 = vmul.f32 %v4359_v7, %v6824_v31  ;;  %v4361_v13 = vsel %vm1325_vm7, %v4357_v10, %v4351_v52  ;;  %v4358_v8 = vsel %vm1325_vm7, %v4355_v6, %v4357_v10 }
 0x3d6   :  { %v4365_v14 = vmul.f32 %v4361_v13, %v6821_v30  ;;  %v4364_v27 = vmul.f32 %v4358_v8, %v6830_v33 }
 0x3d7   :  { %4371 = vmatprep.subr.mxu0 %v4363_v12  ;;  %v4518_v23 = vpop.permute.xlu1 %4517 }
 0x3d8   :  { %v4520_v26 = vpop.permute.xlu0 %4519  ;;  %4442 = vmatprep.subr.mxu1 %v4365_v14 }
 0x3d9   :  { %6279 = vmatmul.mubr.msk.f32.vlgmr.msra.gmra.mrb[4].mxu0 %vm71_vm2, %v6278_v15  ;;  %v4527_v35 = vsel %vm1516_vm8, %v4518_v23, %v4520_v26 }
 0x3da   :  { %4372 = vmatpush1.msra.mxu0 %v4362_v25  ;;  %6280 = vmatmul.mubr.msk.f32.vlgmr.msra.gmra.mrb[4].mxu1 %vm71_vm2, %v6278_v15  ;;  %v4529_v52 = vmul.f32 %v4527_v35, %v6862_v1 }
 0x3db   :  { %4443 = vmatpush1.msra.mxu1 %v4364_v27  ;;  %v4522_v28 = vpop.permute.xlu1 %4521  ;;  %4435 = vmatprep.mubr.f32.mxu0 %v6460_v2  ;;  %v6315_v27 = vld [vmem:[%s7584_s4 + $0x8] sm:$0xff] }
 0x3dc   :  { %v4526_v29 = vsel %vm1516_vm8, %v4520_v26, %v4522_v28  ;;  %v4524_v34 = vpop.permute.xlu0 %4523  ;;  %4506 = vmatprep.mubr.f32.mxu1 %v6460_v2 }
 0x3dd   :  { %v4530_v43 = vmul.f32 %v4526_v29, %v6859_v60  ;;  %v4528_v44 = vsel %vm1516_vm8, %v4524_v34, %v4518_v23  ;;  %v4525_v45 = vsel %vm1516_vm8, %v4522_v28, %v4524_v34 }
 0x3de   :  { %v4532_v49 = vmul.f32 %v4528_v44, %v6856_v59  ;;  %v4531_v54 = vmul.f32 %v4525_v45, %v6865_v4 }
 0x3df   :  { %4538 = vmatprep.subr.mxu0 %v4530_v43 }
 0x3e0   :  { %4609 = vmatprep.subr.mxu1 %v4532_v49 }
 0x3e1   :  { %6282 = vmatmul.mubr.msk.f32.vlgmr.msra.gmra.mrb[4].mxu0 %vm71_vm2, %v6281_v50 }
 0x3e2   :  { %4539 = vmatpush1.msra.mxu0 %v4529_v52  ;;  %6283 = vmatmul.mubr.msk.f32.vlgmr.msra.gmra.mrb[4].mxu1 %vm71_vm2, %v6281_v50 }
 0x3e3   :  { %4610 = vmatpush1.msra.mxu1 %v4531_v54  ;;  %4602 = vmatprep.mubr.f32.mxu0 %v6460_v2 }
 0x3e4   :  { %4673 = vmatprep.mubr.f32.mxu1 %v6460_v2 }
 0x3e9   :  { %6285 = vmatmul.mubr.msk.f32.vlgmr.msra.gmra.mrb[4].mxu0 %vm71_vm2, %v6284_v55 }
 0x3ea   :  { %6286 = vmatmul.mubr.msk.f32.vlgmr.msra.gmra.mrb[4].mxu1 %vm71_vm2, %v6284_v55  ;;  %4786 = vmatprep.mubr.f32.mxu0 %v6460_v2 }
 0x3eb   :  { %4857 = vmatprep.mubr.f32.mxu1 %v6460_v2 }
 0x3ec   :  { %v4689_v5 = vpop.permute.xlu1 %4688 }
 0x4bc   :  { %v4604_v6 = vpop.f32.mrb[4].mxu0 }
 0x4bd   :  { %v4691_v7 = vadd.f32 %v4689_v5, %v4604_v6  ;;  %v4606_v10 = vpop.f32.mrb[5].mxu0  ;;  %v4675_v11 = vpop.f32.mrb[4].mxu1 }
 0x4be   :  { %v4692_v12 = vadd.f32 %v4689_v5, %v4606_v10  ;;  %v4677_v13 = vpop.f32.mrb[5].mxu1  ;;  %v4693_v14 = vadd.f32 %v4689_v5, %v4675_v11 }
 0x4bf   :  { %v7361_v8 = vmax.f32 %v4691_v7, 0.0  ;;  %v4694_v23 = vadd.f32 %v4689_v5, %v4677_v13 }
 0x4c0   :  { %v4696_v15 = vmax.f32 %v4692_v12, 0.0  ;;  %v4697_v25 = vmax.f32 %v4693_v14, 0.0 }
 0x4c1   :  { %4701 = vrot.lane.b32.xlu0 %v7361_v8, %s6461_s25  ;;  %v4698_v26 = vmax.f32 %v4694_v23, 0.0 }
 0x4c2   :  { %4703 = vrot.lane.b32.xlu1 %v4696_v15, %s6461_s25 }
 0x4c5   :  { %4705 = vrot.lane.b32.xlu0 %v4697_v25, %s6461_s25 }
 0x4c6   :  { %4707 = vrot.lane.b32.xlu1 %v4698_v26, %s6461_s25 }
 0x4c9   :  { %5009 = vrot.lane.b32.xlu0 %v7361_v8, %s6462_s30 }
 0x4ca   :  { %5011 = vrot.lane.b32.xlu1 %v4696_v15, %s6462_s30 }
 0x4cd   :  { %5013 = vrot.lane.b32.xlu0 %v4697_v25, %s6462_s30 }
 0x4ce   :  { %5015 = vrot.lane.b32.xlu1 %v4698_v26, %s6462_s30 }
 0x4d1   :  { %5176 = vrot.lane.b32.xlu0 %v7361_v8, %s6463_s7 }
 0x4d2   :  { %5178 = vrot.lane.b32.xlu1 %v4696_v15, %s6463_s7 }
 0x4d5   :  { %5180 = vrot.lane.b32.xlu0 %v4697_v25, %s6463_s7 }
 0x4d6   :  { %5182 = vrot.lane.b32.xlu1 %v4698_v26, %s6463_s7 }
 0x4d9   :  { %5343 = vrot.lane.b32.xlu0 %v7361_v8, %s6464_s8 }
 0x4da   :  { %5345 = vrot.lane.b32.xlu1 %v4696_v15, %s6464_s8 }
 0x4dd   :  { %5347 = vrot.lane.b32.xlu0 %v4697_v25, %s6464_s8 }
 0x4de   :  { %5349 = vrot.lane.b32.xlu1 %v4698_v26, %s6464_s8 }
 0x4e1   :  { %5510 = vrot.lane.b32.xlu0 %v7361_v8, %s6465_s9 }
 0x4e2   :  { %5512 = vrot.lane.b32.xlu1 %v4696_v15, %s6465_s9 }
 0x4e5   :  { %5514 = vrot.lane.b32.xlu0 %v4697_v25, %s6465_s9 }
 0x4e6   :  { %5516 = vrot.lane.b32.xlu1 %v4698_v26, %s6465_s9 }
 0x4e9   :  { %5677 = vrot.lane.b32.xlu0 %v7361_v8, %s6466_s10 }
 0x4ea   :  { %5679 = vrot.lane.b32.xlu1 %v4696_v15, %s6466_s10 }
 0x4ed   :  { %5681 = vrot.lane.b32.xlu0 %v4697_v25, %s6466_s10 }
 0x4ee   :  { %5683 = vrot.lane.b32.xlu1 %v4698_v26, %s6466_s10 }
 0x4f1   :  { %5844 = vrot.lane.b32.xlu0 %v7361_v8, %s6467_s11 }
 0x4f2   :  { %5846 = vrot.lane.b32.xlu1 %v4696_v15, %s6467_s11 }
 0x4f5   :  { %5848 = vrot.lane.b32.xlu0 %v4697_v25, %s6467_s11 }
 0x4f6   :  { %5850 = vrot.lane.b32.xlu1 %v4698_v26, %s6467_s11 }
 0x4f9   :  { %6011 = vrot.lane.b32.xlu0 %v7361_v8, %s6468_s12 }
 0x4fa   :  { %6013 = vrot.lane.b32.xlu1 %v4696_v15, %s6468_s12 }
 0x4fd   :  { %6015 = vrot.lane.b32.xlu0 %v4697_v25, %s6468_s12 }
 0x4fe   :  { %6017 = vrot.lane.b32.xlu1 %v4698_v26, %s6468_s12 }
 0x501   :  { %6182 = vperm.xlu0 %6454, %v6315_v27  }
 0x533   :  { %v4702_v28 = vpop.permute.xlu0 %4701 }
 0x534   :  { %v4704_v29 = vpop.permute.xlu1 %4703 }
 0x535   :  { %v4711_v34 = vsel %vm39_vm0, %v4702_v28, %v4704_v29 }
 0x536   :  { %v4714_v35 = vmul.f32 %v4711_v34, %v6615_v19  ;;  %v6289_v19 = vld [vmem:[%s7585_s3 + $0x48] sm:$0xff]  ;;  %v6294_v34 = vld [vmem:[%s7585_s3 + $0x50] sm:$0xff] }
 0x537   :  { %v4706_v43 = vpop.permute.xlu0 %4705 }
 0x538   :  { %v4710_v44 = vsel %vm39_vm0, %v4704_v29, %v4706_v43  ;;  %v4708_v45 = vpop.permute.xlu1 %4707  ;;  %4722 = vmatprep.subr.mxu0 %v4714_v35 }
 0x539   :  { %v4709_v49 = vsel %vm39_vm0, %v4706_v43, %v4708_v45  ;;  %v4712_v50 = vsel %vm39_vm0, %v4708_v45, %v4702_v28  ;;  %v4715_v55 = vmul.f32 %v4710_v44, %v6621_v21 }
 0x53a   :  { %v4713_v52 = vmul.f32 %v4712_v50, %v6618_v20  ;;  %v4716_v54 = vmul.f32 %v4709_v49, %v6612_v18 }
 0x53b   :  { %v5010_v5 = vpop.permute.xlu0 %5009 }
 0x53c   :  { %v5012_v6 = vpop.permute.xlu1 %5011  ;;  %4723 = vmatpush1.msra.mxu0 %v4713_v52  ;;  %4793 = vmatprep.subr.mxu1 %v4716_v54 }
 0x53d   :  { %v5019_v7 = vsel %vm370_vm1, %v5010_v5, %v5012_v6  ;;  %6290 = vmatmul.mubr.msk.f32.vlgmr.msra.gmra.mrb[6].mxu0 %vm71_vm2, %v6289_v19  ;;  %4794 = vmatpush1.msra.mxu1 %v4715_v55 }
 0x53e   :  { %v5022_v20 = vmul.f32 %v5019_v7, %v6625_v24  ;;  %4867 = vmatprep.subr.mxu0 %v4696_v15  ;;  %6291 = vmatmul.mubr.msk.f32.vlgmr.msra.gmra.mrb[6].mxu1 %vm71_vm2, %v6289_v19  ;;  %v6297_v19 = vld [vmem:[%s7585_s3 + $0x58] sm:$0xff] }
 0x53f   :  { %4868 = vmatpush1.msra.mxu0 %v7361_v8  ;;  %4938 = vmatprep.subr.mxu1 %v4698_v26  ;;  %v5014_v18 = vpop.permute.xlu0 %5013  ;;  %v6288_v8 = vld [vmem:[%s7585_s3 + $0x68] sm:$0xff] }
 0x540   :  { %4939 = vmatpush1.msra.mxu1 %v4697_v25  ;;  %v5016_v21 = vpop.permute.xlu1 %5015  ;;  %5030 = vmatprep.subr.mxu0 %v5022_v20  ;;  %v5018_v24 = vsel %vm370_vm1, %v5012_v6, %v5014_v18 }
 0x541   :  { %v5017_v10 = vsel %vm370_vm1, %v5014_v18, %v5016_v21  ;;  %v5020_v11 = vsel %vm370_vm1, %v5016_v21, %v5010_v5  ;;  %4931 = vmatprep.mubr.f32.mxu0 %v6460_v2  ;;  %5002 = vmatprep.mubr.f32.mxu1 %v6460_v2  ;;  %v5023_v23 = vmul.f32 %v5018_v24, %v6655_v40 }
 0x542   :  { %v5021_v12 = vmul.f32 %v5020_v11, %v6651_v39  ;;  %v5024_v13 = vmul.f32 %v5017_v10, %v6648_v38  ;;  %v6300_v11 = vld [vmem:[%s7585_s3 + $0x60] sm:$0xff] }
 0x543   :  { %v5177_v14 = vpop.permute.xlu0 %5176 }
 0x544   :  { %v5179_v15 = vpop.permute.xlu1 %5178  ;;  %5101 = vmatprep.subr.mxu1 %v5024_v13 }
 0x545   :  { %v5186_v25 = vsel %vm561_vm3, %v5177_v14, %v5179_v15  ;;  %6292 = vmatmul.mubr.msk.f32.vlgmr.msra.gmra.mrb[6].mxu0 %vm71_vm2, %v6288_v8 }
 0x546   :  { %v5189_v26 = vmul.f32 %v5186_v25, %v6674_v48  ;;  %5031 = vmatpush1.msra.mxu0 %v5021_v12  ;;  %6293 = vmatmul.mubr.msk.f32.vlgmr.msra.gmra.mrb[6].mxu1 %vm71_vm2, %v6288_v8 }
 0x547   :  { %5102 = vmatpush1.msra.mxu1 %v5023_v23  ;;  %v5181_v38 = vpop.permute.xlu0 %5180  ;;  %5094 = vmatprep.mubr.f32.mxu0 %v6460_v2 }
 0x548   :  { %v5183_v39 = vpop.permute.xlu1 %5182  ;;  %5197 = vmatprep.subr.mxu0 %v5189_v26  ;;  %5165 = vmatprep.mubr.f32.mxu1 %v6460_v2  ;;  %v5185_v48 = vsel %vm561_vm3, %v5179_v15, %v5181_v38  ;;  %v6303_v26 = vld [vmem:[%s7585_s3 + $0x70] sm:$0xff] }
 0x549   :  { %v5184_v40 = vsel %vm561_vm3, %v5181_v38, %v5183_v39  ;;  %v5187_v27 = vsel %vm561_vm3, %v5183_v39, %v5177_v14  ;;  %v5190_v44 = vmul.f32 %v5185_v48, %v6693_v58 }
 0x54a   :  { %v5188_v28 = vmul.f32 %v5187_v27, %v6690_v57  ;;  %v5191_v29 = vmul.f32 %v5184_v40, %v6687_v56 }
 0x54b   :  { %v5344_v35 = vpop.permute.xlu0 %5343 }
 0x54c   :  { %v5346_v43 = vpop.permute.xlu1 %5345  ;;  %5268 = vmatprep.subr.mxu1 %v5191_v29 }
 0x54d   :  { %v5353_v45 = vsel %vm752_vm4, %v5344_v35, %v5346_v43  ;;  %6295 = vmatmul.mubr.msk.f32.vlgmr.msra.gmra.mrb[6].mxu0 %vm71_vm2, %v6294_v34 }
 0x54e   :  { %v5356_v49 = vmul.f32 %v5353_v45, %v6709_v3  ;;  %5198 = vmatpush1.msra.mxu0 %v5188_v28  ;;  %6296 = vmatmul.mubr.msk.f32.vlgmr.msra.gmra.mrb[6].mxu1 %vm71_vm2, %v6294_v34 }
 0x54f   :  { %5269 = vmatpush1.msra.mxu1 %v5190_v44  ;;  %v5348_v56 = vpop.permute.xlu0 %5347  ;;  %5261 = vmatprep.mubr.f32.mxu0 %v6460_v2 }
 0x550   :  { %v5350_v57 = vpop.permute.xlu1 %5349  ;;  %5364 = vmatprep.subr.mxu0 %v5356_v49  ;;  %5332 = vmatprep.mubr.f32.mxu1 %v6460_v2  ;;  %v5352_v3 = vsel %vm752_vm4, %v5346_v43, %v5348_v56 }
 0x551   :  { %v5351_v58 = vsel %vm752_vm4, %v5348_v56, %v5350_v57  ;;  %v5354_v50 = vsel %vm752_vm4, %v5350_v57, %v5344_v35  ;;  %v5357_v6 = vmul.f32 %v5352_v3, %v6728_v22  ;;  %v6306_v35 = vld [vmem:[%s7585_s3 + $0x78] sm:$0xff]  ;;  %v6309_v3 = vld [vmem:[%s7585_s3 + $0x80] sm:$0xff] }
 0x552   :  { %v5355_v52 = vmul.f32 %v5354_v50, %v6725_v17  ;;  %v5358_v54 = vmul.f32 %v5351_v58, %v6722_v16 }
 0x553   :  { %v5511_v55 = vpop.permute.xlu0 %5510 }
 0x554   :  { %v5513_v5 = vpop.permute.xlu1 %5512  ;;  %5435 = vmatprep.subr.mxu1 %v5358_v54 }
 0x555   :  { %6298 = vmatmul.mubr.msk.f32.vlgmr.msra.gmra.mrb[6].mxu0 %vm71_vm2, %v6297_v19  ;;  %v5520_v20 = vsel %vm943_vm5, %v5511_v55, %v5513_v5 }
 0x556   :  { %5365 = vmatpush1.msra.mxu0 %v5355_v52  ;;  %6299 = vmatmul.mubr.msk.f32.vlgmr.msra.gmra.mrb[6].mxu1 %vm71_vm2, %v6297_v19  ;;  %v5522_v12 = vmul.f32 %v5520_v20, %v6757_v41 }
 0x557   :  { %5436 = vmatpush1.msra.mxu1 %v5357_v6  ;;  %v5515_v7 = vpop.permute.xlu0 %5514  ;;  %5428 = vmatprep.mubr.f32.mxu0 %v6460_v2 }
 0x558   :  { %v5519_v16 = vsel %vm943_vm5, %v5513_v5, %v5515_v7  ;;  %v5517_v17 = vpop.permute.xlu1 %5516  ;;  %5499 = vmatprep.mubr.f32.mxu1 %v6460_v2 }
 0x559   :  { %v5523_v22 = vmul.f32 %v5519_v16, %v6754_v37  ;;  %v5521_v18 = vsel %vm943_vm5, %v5517_v17, %v5511_v55  ;;  %v5518_v21 = vsel %vm943_vm5, %v5515_v7, %v5517_v17 }
 0x55a   :  { %v5525_v10 = vmul.f32 %v5521_v18, %v6751_v36  ;;  %v5524_v37 = vmul.f32 %v5518_v21, %v6760_v42 }
 0x55b   :  { %5531 = vmatprep.subr.mxu0 %v5523_v22  ;;  %v5678_v24 = vpop.permute.xlu0 %5677 }
 0x55c   :  { %v5680_v13 = vpop.permute.xlu1 %5679  ;;  %5602 = vmatprep.subr.mxu1 %v5525_v10 }
 0x55d   :  { %6301 = vmatmul.mubr.msk.f32.vlgmr.msra.gmra.mrb[6].mxu0 %vm71_vm2, %v6300_v11  ;;  %v5687_v41 = vsel %vm1134_vm6, %v5678_v24, %v5680_v13 }
 0x55e   :  { %5532 = vmatpush1.msra.mxu0 %v5522_v12  ;;  %6302 = vmatmul.mubr.msk.f32.vlgmr.msra.gmra.mrb[6].mxu1 %vm71_vm2, %v6300_v11  ;;  %v5689_v39 = vmul.f32 %v5687_v41, %v6792_v63 }
 0x55f   :  { %5603 = vmatpush1.msra.mxu1 %v5524_v37  ;;  %v5682_v8 = vpop.permute.xlu0 %5681  ;;  %5595 = vmatprep.mubr.f32.mxu0 %v6460_v2 }
 0x560   :  { %v5686_v36 = vsel %vm1134_vm6, %v5680_v13, %v5682_v8  ;;  %v5684_v14 = vpop.permute.xlu1 %5683  ;;  %5666 = vmatprep.mubr.f32.mxu1 %v6460_v2 }
 0x561   :  { %v5690_v42 = vmul.f32 %v5686_v36, %v6789_v62  ;;  %v5688_v15 = vsel %vm1134_vm6, %v5684_v14, %v5678_v24  ;;  %v5685_v23 = vsel %vm1134_vm6, %v5682_v8, %v5684_v14 }
 0x562   :  { %v5692_v25 = vmul.f32 %v5688_v15, %v6786_v61  ;;  %v5691_v62 = vmul.f32 %v5685_v23, %v6795_v0 }
 0x563   :  { %5698 = vmatprep.subr.mxu0 %v5690_v42  ;;  %v5845_v38 = vpop.permute.xlu0 %5844 }
 0x564   :  { %v5847_v40 = vpop.permute.xlu1 %5846  ;;  %5769 = vmatprep.subr.mxu1 %v5692_v25 }
 0x565   :  { %6304 = vmatmul.mubr.msk.f32.vlgmr.msra.gmra.mrb[6].mxu0 %vm71_vm2, %v6303_v26  ;;  %v5854_v63 = vsel %vm1325_vm7, %v5845_v38, %v5847_v40 }
 0x566   :  { %5699 = vmatpush1.msra.mxu0 %v5689_v39  ;;  %6305 = vmatmul.mubr.msk.f32.vlgmr.msra.gmra.mrb[6].mxu1 %vm71_vm2, %v6303_v26  ;;  %v5856_v44 = vmul.f32 %v5854_v63, %v6827_v32 }
 0x567   :  { %5770 = vmatpush1.msra.mxu1 %v5691_v62  ;;  %v5849_v27 = vpop.permute.xlu0 %5848  ;;  %5762 = vmatprep.mubr.f32.mxu0 %v6460_v2 }
 0x568   :  { %v5853_v61 = vsel %vm1325_vm7, %v5847_v40, %v5849_v27  ;;  %v5851_v48 = vpop.permute.xlu1 %5850  ;;  %5833 = vmatprep.mubr.f32.mxu1 %v6460_v2 }
 0x569   :  { %v5857_v0 = vmul.f32 %v5853_v61, %v6824_v31  ;;  %v5855_v28 = vsel %vm1325_vm7, %v5851_v48, %v5845_v38  ;;  %v5852_v29 = vsel %vm1325_vm7, %v5849_v27, %v5851_v48 }
 0x56a   :  { %v5859_v34 = vmul.f32 %v5855_v28, %v6821_v30  ;;  %v5858_v31 = vmul.f32 %v5852_v29, %v6830_v33 }
 0x56b   :  { %5865 = vmatprep.subr.mxu0 %v5857_v0  ;;  %v6012_v43 = vpop.permute.xlu0 %6011 }
 0x56c   :  { %v6014_v45 = vpop.permute.xlu1 %6013  ;;  %5936 = vmatprep.subr.mxu1 %v5859_v34 }
 0x56d   :  { %6307 = vmatmul.mubr.msk.f32.vlgmr.msra.gmra.mrb[6].mxu0 %vm71_vm2, %v6306_v35  ;;  %v6021_v32 = vsel %vm1516_vm8, %v6012_v43, %v6014_v45 }
 0x56e   :  { %5866 = vmatpush1.msra.mxu0 %v5856_v44  ;;  %6308 = vmatmul.mubr.msk.f32.vlgmr.msra.gmra.mrb[6].mxu1 %vm71_vm2, %v6306_v35  ;;  %v6023_v52 = vmul.f32 %v6021_v32, %v6862_v1 }
 0x56f   :  { %5937 = vmatpush1.msra.mxu1 %v5858_v31  ;;  %v6016_v49 = vpop.permute.xlu0 %6015  ;;  %5929 = vmatprep.mubr.f32.mxu0 %v6460_v2 }
 0x570   :  { %v6020_v30 = vsel %vm1516_vm8, %v6014_v45, %v6016_v49  ;;  %v6018_v56 = vpop.permute.xlu1 %6017  ;;  %6000 = vmatprep.mubr.f32.mxu1 %v6460_v2 }
 0x571   :  { %v6024_v33 = vmul.f32 %v6020_v30, %v6859_v60  ;;  %v6022_v57 = vsel %vm1516_vm8, %v6018_v56, %v6012_v43  ;;  %v6019_v58 = vsel %vm1516_vm8, %v6016_v49, %v6018_v56 }
 0x572   :  { %v6026_v50 = vmul.f32 %v6022_v57, %v6856_v59  ;;  %v6025_v54 = vmul.f32 %v6019_v58, %v6865_v4 }
 0x573   :  { %6032 = vmatprep.subr.mxu0 %v6024_v33 }
 0x574   :  { %6103 = vmatprep.subr.mxu1 %v6026_v50 }
 0x575   :  { %6310 = vmatmul.mubr.msk.f32.vlgmr.msra.gmra.mrb[6].mxu0 %vm71_vm2, %v6309_v3 }
 0x576   :  { %6033 = vmatpush1.msra.mxu0 %v6023_v52  ;;  %6311 = vmatmul.mubr.msk.f32.vlgmr.msra.gmra.mrb[6].mxu1 %vm71_vm2, %v6309_v3 }
 0x577   :  { %6104 = vmatpush1.msra.mxu1 %v6025_v54  ;;  %6096 = vmatprep.mubr.f32.mxu0 %v6460_v2 }
 0x578   :  { %6167 = vmatprep.mubr.f32.mxu1 %v6460_v2 }
 0x57d   :  { %6313 = vmatmul.mubr.msk.f32.vlgmr.msra.gmra.mrb[6].mxu0 %vm71_vm2, %v6312_v9 }
 0x57e   :  { %6314 = vmatmul.mubr.msk.f32.vlgmr.msra.gmra.mrb[6].mxu1 %vm71_vm2, %v6312_v9 }
 0x580   :  { %v6183_v59 = vpop.permute.xlu0 %6182 }
 0x650   :  { %v6098_v60 = vpop.f32.mrb[6].mxu0 }
 0x651   :  { %v6185_v1 = vadd.f32 %v6183_v59, %v6098_v60  ;;  %v6100_v4 = vpop.f32.mrb[7].mxu0  ;;  %v6169_v19 = vpop.f32.mrb[6].mxu1 }
 0x652   :  { %v6186_v55 = vadd.f32 %v6183_v59, %v6100_v4  ;;  %v6187_v5 = vadd.f32 %v6183_v59, %v6169_v19  ;;  %v6171_v6 = vpop.f32.mrb[7].mxu1 }
 0x653   :  { %v6189_v7 = vadd.f32 %v6185_v1, %v7114_v46  ;;  %v6188_v16 = vadd.f32 %v6183_v59, %v6171_v6 }
 0x654   :  { %v6190_v2 = vadd.f32 %v6186_v55, %v7119_v47  ;;  %v6191_v17 = vadd.f32 %v6187_v5, %v7128_v51 }
 0x655   :  { %6193 = vst [vmem:[%s7586_s6] sm:$0xff] %v6189_v7  ;;  %v6192_v20 = vadd.f32 %v6188_v16, %v7133_v53 }
 0x656   :  { %6194 = vst [vmem:[%s7586_s6 + $0x8] sm:$0xff] %v6190_v2  ;;  %6195 = vst [vmem:[%s7586_s6 + $0x10] sm:$0xff] %v6191_v17 }
 0x657   :  { %6196 = vst [vmem:[%s7586_s6 + $0x18] sm:$0xff] %v6192_v20 }

</bundles_post_ra>
